<compile_context>
chip_gen: v6e
topology: v6e:2x2x1
jax: 0.10.0
libtpu: 0.0.40
codegen_flags: <defaults>
</compile_context>

<pallas_src>
import numpy as np
import jax
import jax.numpy as jnp
from jax import lax
from jax.experimental import pallas as pl
from jax.experimental.pallas import tpu as pltpu

_PDE_BC_TYPES = ("Neumann", "Radiation", "Convection")


def _build_components_fn(param, B, H, W, compute_mixbc):
    """Returns a jitted fn (HSD, out) -> (6,) f32 loss components.

    Component order: [inner, neumann, radiation, mixBC, convection, hsd]
    (same as the attribute order of the torch module).
    """
    hx = float(param["mesh_size"][0])
    hy = float(param["mesh_size"][1])
    MR = hy / hx
    MR2 = MR * MR
    iMR2 = 1.0 / MR2
    htr = float(param["Heat Transfer Rate"])
    T_a = float(param["T_a"])
    SB = 5.67e-08
    AZ = -273.15
    amb4 = (T_a - AZ) ** 4
    coe_x_conv = 2 * hx * float(param["Convective coe"]) / htr
    coe_y_conv = 2 * hy * float(param["Convective coe"]) / htr
    coe_x_neu = 2 * hx * float(param["q"]) / htr
    coe_y_neu = 2 * hy * float(param["q"]) / htr
    coe_x_rad = 2 * hx * float(param["Emissivity"]) * SB / htr
    coe_y_rad = 2 * hy * float(param["Emissivity"]) * SB / htr
    BCs = list(param["BCs"])
    BC_regular = bool(param["BC_regular"])
    HS_regular = bool(param["HS_regular"])

    # Static heat-source rectangles (same rounding as the torch code).
    regions = []
    for reg in param["HS_region"]:
        rx0 = round(float(reg[0][0]) / hx); rx1 = round(float(reg[0][1]) / hx)
        ry0 = round(float(reg[1][0]) / hy); ry1 = round(float(reg[1][1]) / hy)
        regions.append((rx0, rx1, ry0, ry1))

    # Active boundary edges: (bc_type, kind, boundary_line_index, inner_line_index)
    #   kind "col": j-boundary (left/right column);  transverse axis = i (length H)
    #   kind "row": i-boundary (top/bottom row);     transverse axis = j (length W)
    edges = []
    if BCs[0] in _PDE_BC_TYPES: edges.append((BCs[0], "col", W - 1, W - 2))
    if BCs[1] in _PDE_BC_TYPES: edges.append((BCs[1], "col", 0, 1))
    if BCs[2] in _PDE_BC_TYPES: edges.append((BCs[2], "row", 0, 1))
    if BCs[3] in _PDE_BC_TYPES: edges.append((BCs[3], "row", H - 1, H - 2))
    need_transpose = any(kind == "col" for _, kind, _, _ in edges)

    # Static element counts (per batch element) for the means.
    def _edge_n(kind):
        return H if kind == "col" else W

    cnt_inner = (H - 2) * (W - 2)
    cnt_neu = sum(_edge_n(k) - 2 for bc, k, _, _ in edges if bc == "Neumann")
    cnt_rad = sum(_edge_n(k) - 2 for bc, k, _, _ in edges if bc == "Radiation")
    cnt_conv = sum(_edge_n(k) - 2 for bc, k, _, _ in edges if bc == "Convection")
    cnt_conv_reg = sum(_edge_n(k) for bc, k, _, _ in edges if bc == "Convection")
    cnt_mix = max(W - 53, 0)          # lanes 52 .. W-2
    cnt_mix_reg = max(W - 51, 0)      # lanes 51 .. W-1
    cnt_hsd = sum((rx1 - rx0 + 1) * (ry1 - ry0 + 1) for rx0, rx1, ry0, ry1 in regions)

    NSUMS = 9  # inner, neu, rad, conv, conv_reg, mix, mix_reg, hsd, hsd_reg

    # ------------------------------ kernel ------------------------------------
    def kernel(t_ref, s_ref, o_ref):
        T = t_ref[...]                                  # (H, W) f32, one batch elem

        row_hw = lax.broadcasted_iota(jnp.int32, (H, W), 0)
        col_hw = lax.broadcasted_iota(jnp.int32, (H, W), 1)

        # ---- interior 5-point stencil: rolls + static mask, one reduce --------
        # Neighbour sums are symmetric, so the roll direction convention is moot.
        vert = pltpu.roll(T, 1, axis=0) + pltpu.roll(T, H - 1, axis=0)
        horz = pltpu.roll(T, 1, axis=1) + pltpu.roll(T, W - 1, axis=1)
        f_in = (hy * hy) * vert + (hx * hx) * horz - (2.0 * (hx * hx + hy * hy)) * T
        interior = ((row_hw >= 1) & (row_hw <= H - 2)
                    & (col_hw >= 1) & (col_hw <= W - 2))
        s_inner = jnp.sum(jnp.where(interior, jnp.abs(f_in), 0.0))

        # ---- boundary residuals on lane-dense (1, n) lines ---------------------
        lane_w = lax.broadcasted_iota(jnp.int32, (1, W), 1)
        lane_h = lax.broadcasted_iota(jnp.int32, (1, H), 1)
        inner_w = (lane_w >= 1) & (lane_w <= W - 2)
        inner_h = (lane_h >= 1) & (lane_h <= H - 2)

        Tt = T.T if need_transpose else None            # columns -> lane-dense rows

        def nbr_sum(line, n):
            return pltpu.roll(line, 1, axis=1) + pltpu.roll(line, n - 1, axis=1)

        s_neu = 0.0
        s_rad = 0.0
        s_conv = 0.0
        s_conv_reg = 0.0

        for bc, kind, bidx, nidx in edges:
            if kind == "col":
                b = Tt[bidx:bidx + 1, :]
                nb = Tt[nidx:nidx + 1, :]
                n, m = H, inner_h
                B2, cN, cR, cC, hreg = MR2, coe_y_neu, coe_y_rad, coe_y_conv, hy
            else:
                b = T[bidx:bidx + 1, :]
                nb = T[nidx:nidx + 1, :]
                n, m = W, inner_w
                B2, cN, cR, cC, hreg = iMR2, coe_x_neu, coe_x_rad, coe_x_conv, hx
            nsum = nbr_sum(b, n)
            if bc == "Neumann":
                f = (2.0 + 2.0 * B2) * b - 2.0 * nb - B2 * nsum - cN
                s_neu = s_neu + jnp.sum(jnp.where(m, jnp.abs(f), 0.0))
            elif bc == "Radiation":
                bs = b - AZ
                bs4 = (bs * bs) * (bs * bs)
                f = 2.0 * nb - (2.0 + 2.0 * B2) * b + B2 * nsum - cR * (bs4 - amb4)
                s_rad = s_rad + jnp.sum(jnp.where(m, jnp.abs(f), 0.0))
            else:  # Convection
                f = (2.0 * B2 + 2.0 + cC) * b - B2 * nsum - 2.0 * nb - cC * T_a
                s_conv = s_conv + jnp.sum(jnp.where(m, jnp.abs(f), 0.0))
                if BC_regular:
                    rg = (b - nb) / hreg
                    s_conv_reg = s_conv_reg + jnp.sum(jnp.exp(-200.0 * rg * rg))

        # ---- mixed BC (dead in forward(); flag-gated) --------------------------
        s_mix = 0.0
        s_mix_reg = 0.0
        if compute_mixbc:
            rb = T[H - 1:H, :]
            rb2 = T[H - 2:H - 1, :]
            f = (2.0 * iMR2 + 2.0) * rb - 2.0 * rb2 - iMR2 * nbr_sum(rb, W)
            mmask = (lane_w >= 52) & (lane_w <= W - 2)
            s_mix = jnp.sum(jnp.where(mmask, jnp.abs(f), 0.0))
            if BC_regular:
                rg = (rb - rb2) / hx
                s_mix_reg = jnp.sum(
                    jnp.where(lane_w >= 51, jnp.exp(-75000.0 * rg * rg), 0.0))

        # ---- heat-source data loss: static rectangle masks ---------------------
        s_hsd = 0.0
        s_hsd_reg = 0.0
        if regions:
            wsum = jnp.zeros((H, W), jnp.float32)
            for rx0, rx1, ry0, ry1 in regions:
                rm = ((row_hw >= rx0) & (row_hw <= rx1)
                      & (col_hw >= ry0) & (col_hw <= ry1)).astype(jnp.float32)
                wsum = wsum + rm     # multiplicity weight handles overlapping regions
                if HS_regular:
                    size_r = float((rx1 - rx0 + 1) * (ry1 - ry0 + 1))
                    mean_r = jnp.sum(T * rm) / size_r
                    s_hsd_reg = s_hsd_reg + jnp.sum(jnp.abs(T - mean_r) * rm)
            s_hsd = jnp.sum(jnp.abs(s_ref[...] - T) * wsum)

        # ---- single lane-dense (8, 128) output tile per batch element ----------
        lane_o = lax.broadcasted_iota(jnp.int32, (8, 128), 1)
        row_o = lax.broadcasted_iota(jnp.int32, (8, 128), 0)
        is_r0 = row_o == 0
        res = jnp.zeros((8, 128), jnp.float32)
        for idx, v in enumerate((s_inner, s_neu, s_rad, s_conv, s_conv_reg,
                                 s_mix, s_mix_reg, s_hsd, s_hsd_reg)):
            if isinstance(v, float):     # statically absent component -> stays 0
                continue
            res = jnp.where(is_r0 & (lane_o == idx), v, res)
        o_ref[...] = res

    # ------------------------------ pallas_call --------------------------------
    n_lines = max(len(edges), 1)
    cost = pl.CostEstimate(
        flops=int(B * (14 * H * W + 4 * H * W * (len(regions) + 1)
                       + 24 * n_lines * max(H, W))),
        transcendentals=int(B * 2 * (H + W)),
        bytes_accessed=int(4 * (2 * B * H * W + B * 8 * 128)),
    )

    call = pl.pallas_call(
        kernel,
        out_shape=jax.ShapeDtypeStruct((B, 8, 128), jnp.float32),
        grid=(B,),
        in_specs=[
            # (B, 1, H, W): batch + channel squeezed via the BlockSpec -> kernel
            # sees a dense (H, W) slab; no wrapper-side slice / extra HBM copy.
            pl.BlockSpec((None, None, H, W), lambda b: (b, 0, 0, 0)),
            pl.BlockSpec((None, H, W), lambda b: (b, 0, 0)),
        ],
        out_specs=pl.BlockSpec((None, 8, 128), lambda b: (b, 0, 0)),
        compiler_params=pltpu.CompilerParams(dimension_semantics=("parallel",)),
        cost_estimate=cost,
    )

    # --------------------- jitted combine (static counts) ----------------------
    def components(HSD, out):
        if out.dtype != jnp.float32:
            out = out.astype(jnp.float32)
        if HSD.dtype != jnp.float32:
            HSD = HSD.astype(jnp.float32)
        sums = call(out, HSD)                       # (B, 8, 128) per-batch sums
        s = jnp.sum(sums[:, 0, :NSUMS], axis=0)     # totals over the batch

        zero = jnp.float32(0.0)
        l_inner = s[0] / (B * cnt_inner)
        # Guard: a BC type with no active edge would be 0/0 here (the torch code
        # actually raises on torch.cat([])); report 0 instead of NaN.
        l_neu = s[1] / (B * cnt_neu) if cnt_neu else zero
        l_rad = s[2] / (B * cnt_rad) if cnt_rad else zero
        l_conv = s[3] / (B * cnt_conv) if cnt_conv else zero
        if BC_regular and cnt_conv_reg:
            l_conv = l_conv + 0.01 * s[4] / (B * cnt_conv_reg)
        if compute_mixbc and cnt_mix:
            l_mix = s[5] / (B * cnt_mix)
            if BC_regular and cnt_mix_reg:
                l_mix = l_mix + 0.05 * s[6] / (B * cnt_mix_reg)
        else:
            l_mix = zero
        l_hsd = s[7] / (B * cnt_hsd) if cnt_hsd else zero
        if HS_regular and cnt_hsd:
            l_hsd = l_hsd + s[8] / (B * cnt_hsd)
        return jnp.stack([l_inner, l_neu, l_rad, l_mix, l_conv, l_hsd])

    return jax.jit(components)


class UncertaintyLossPallas:
    """JAX/Pallas port of UncertaintyLoss (forward pass)."""

    def __init__(self, param, key, compute_mixbc=False):
        # compute_mixbc: loss_mixBC is never consumed by forward() nor
        # getLossComponent() in the reference module; keep it off by default
        # (set True for exact torch attribute parity of self.loss_t_mixBC).
        self.param = param
        self.task_num = len(param["BCs"]) + 2
        self.sigma = jax.random.normal(key, (self.task_num,), dtype=jnp.float32)
        self.compute_mixbc = compute_mixbc
        self._component_fns = {}                       # (B, H, W) -> jitted fn
        self._total_fn = jax.jit(self._weighted_total)

    @staticmethod
    def _weighted_total(comps, sigma):
        s2 = sigma ** 2
        tot = 0.5 / s2[0] * comps[0] + jnp.log(s2[0] + 1)
        tot = tot + 0.5 / s2[1] * comps[1] + jnp.log(s2[1] + 1)
        tot = tot + 0.5 / s2[2] * comps[2] + jnp.log(s2[2] + 1)
        # sigma[3] (mixBC) intentionally skipped, as in the torch module.
        tot = tot + 0.5 / s2[4] * comps[4] + jnp.log(s2[4] + 1)
        tot = tot + 0.5 / s2[5] * comps[5] + jnp.log(s2[5] + 1)
        return tot

    def _get_components_fn(self, B, H, W):
        key = (B, H, W)
        fn = self._component_fns.get(key)
        if fn is None:
            fn = _build_components_fn(self.param, B, H, W, self.compute_mixbc)
            self._component_fns[key] = fn
        return fn

    def forward(self, HSD, out, epoch):
        B, C, H, W = out.shape
        assert C == 1
        comps = self._get_components_fn(B, H, W)(HSD, out)
        (self.loss_t_inner, self.loss_t_neumann, self.loss_t_radiation,
         self.loss_t_mixBC, self.loss_t_convection, self.loss_hsd) = \
            [comps[i] for i in range(6)]
        if epoch < 500:
            return self.loss_hsd
        return self._total_fn(comps, self.sigma)

    def getLossComponent(self):
        return (self.loss_t_inner, self.loss_t_neumann, self.loss_t_radiation,
                self.loss_t_convection, self.loss_hsd)


# ---------------- pure-JAX reference (mirrors the torch code) ----------------
def _reference_forward(HSD, out, sigma, param, epoch):
    hx, hy = param["mesh_size"]
    MR = hy / hx
    T = out[:, 0].astype(jnp.float32)
    S = HSD.astype(jnp.float32)
    BCs = param["BCs"]

    # loss_T_inner
    f_in = hy ** 2 * (T[:, 2:, 1:-1] + T[:, :-2, 1:-1]) \
         + hx ** 2 * (T[:, 1:-1, 2:] + T[:, 1:-1, :-2]) \
         - 2 * (hx ** 2 + hy ** 2) * T[:, 1:-1, 1:-1]
    l_inner = jnp.mean(jnp.abs(f_in))

    # loss_neumann
    cx = 2 * hx * param["q"] / param["Heat Transfer Rate"]
    cy = 2 * hy * param["q"] / param["Heat Transfer Rate"]
    fs = []
    if BCs[0] == "Neumann":
        fs.append(((2 + 2 * MR ** 2) * T[:, 1:-1, -1] - 2 * T[:, 1:-1, -2]
                   - MR ** 2 * (T[:, 2:, -1] + T[:, :-2, -1]) - cy).ravel())
    if BCs[1] == "Neumann":
        fs.append(((2 + 2 * MR ** 2) * T[:, 1:-1, 0] - 2 * T[:, 1:-1, 1]
                   - MR ** 2 * (T[:, 2:, 0] + T[:, :-2, 0]) - cy).ravel())
    if BCs[2] == "Neumann":
        fs.append(((2 / MR ** 2 + 2) * T[:, 0, 1:-1] - 2 * T[:, 1, 1:-1]
                   - (1 / MR ** 2) * (T[:, 0, 2:] + T[:, 0, :-2]) - cx).ravel())
    if BCs[3] == "Neumann":
        fs.append(((2 / MR ** 2 + 2) * T[:, -1, 1:-1] - 2 * T[:, -2, 1:-1]
                   - (1 / MR ** 2) * (T[:, -1, 2:] + T[:, -1, :-2]) - cx).ravel())
    l_neu = jnp.mean(jnp.abs(jnp.concatenate(fs)))

    # loss_radiation
    sb = 5.67e-08; az = -273.15
    cxr = 2 * hx * param["Emissivity"] * sb / param["Heat Transfer Rate"]
    cyr = 2 * hy * param["Emissivity"] * sb / param["Heat Transfer Rate"]
    amb4 = (param["T_a"] - az) ** 4
    fs = []
    if BCs[0] == "Radiation":
        fs.append((2 * T[:, 1:-1, -2] - (2 + 2 * MR ** 2) * T[:, 1:-1, -1]
                   + MR ** 2 * (T[:, 2:, -1] + T[:, :-2, -1])
                   - cyr * ((T[:, 1:-1, -1] - az) ** 4 - amb4)).ravel())
    if BCs[1] == "Radiation":
        fs.append((2 * T[:, 1:-1, 1] - (2 + 2 * MR ** 2) * T[:, 1:-1, 0]
                   + MR ** 2 * (T[:, 2:, 0] + T[:, :-2, 0])
                   - cyr * ((T[:, 1:-1, 0] - az) ** 4 - amb4)).ravel())
    if BCs[2] == "Radiation":
        fs.append((2 * T[:, 1, 1:-1] - (2 + 2 / MR ** 2) * T[:, 0, 1:-1]
                   + (1 / MR ** 2) * (T[:, 0, 2:] + T[:, 0, :-2])
                   - cxr * ((T[:, 0, 1:-1] - az) ** 4 - amb4)).ravel())
    if BCs[3] == "Radiation":
        fs.append((2 * T[:, -2, 1:-1] - (2 + 2 / MR ** 2) * T[:, -1, 1:-1]
                   + (1 / MR ** 2) * (T[:, -1, 2:] + T[:, -1, :-2])
                   - cxr * ((T[:, -1, 1:-1] - az) ** 4 - amb4)).ravel())
    l_rad = jnp.mean(jnp.abs(jnp.concatenate(fs)))

    # loss_convection
    cxc = 2 * hx * param["Convective coe"] / param["Heat Transfer Rate"]
    cyc = 2 * hy * param["Convective coe"] / param["Heat Transfer Rate"]
    fs, regs = [], []
    if BCs[0] == "Convection":
        fs.append(((2 * MR ** 2 + 2.0 + cyc) * T[:, 1:-1, -1]
                   - MR ** 2 * (T[:, 2:, -1] + T[:, :-2, -1])
                   - 2 * T[:, 1:-1, -2] - cyc * param["T_a"]).ravel())
        regs.append(((T[:, :, -1] - T[:, :, -2]) / hy).ravel())
    if BCs[1] == "Convection":
        fs.append(((2 * MR ** 2 + 2.0 + cyc) * T[:, 1:-1, 0]
                   - MR ** 2 * (T[:, 2:, 0] + T[:, :-2, 0])
                   - 2 * T[:, 1:-1, 1] - cyc * param["T_a"]).ravel())
        regs.append(((T[:, :, 0] - T[:, :, 1]) / hy).ravel())
    if BCs[2] == "Convection":
        fs.append(((2 / MR ** 2 + 2.0 + cxc) * T[:, 0, 1:-1]
                   - (1 / MR ** 2) * (T[:, 0, 2:] + T[:, 0, :-2])
                   - 2 * T[:, 1, 1:-1] - cxc * param["T_a"]).ravel())
        regs.append(((T[:, 0, :] - T[:, 1, :]) / hx).ravel())
    if BCs[3] == "Convection":
        fs.append(((2 / MR ** 2 + 2.0 + cxc) * T[:, -1, 1:-1]
                   - (1 / MR ** 2) * (T[:, -1, 2:] + T[:, -1, :-2])
                   - 2 * T[:, -2, 1:-1] - cxc * param["T_a"]).ravel())
        regs.append(((T[:, -1, :] - T[:, -2, :]) / hx).ravel())
    l_conv = jnp.mean(jnp.abs(jnp.concatenate(fs)))
    if param["BC_regular"]:
        reg = jnp.concatenate(regs)
        l_conv = l_conv + 0.01 * jnp.mean(jnp.exp(-200.0 * reg ** 2))

    # loss_HSD
    qerr, regu = [], []
    for r in param["HS_region"]:
        rx0 = round(r[0][0] / hx); rx1 = round(r[0][1] / hx)
        ry0 = round(r[1][0] / hy); ry1 = round(r[1][1] / hy)
        preds = T[:, rx0:rx1 + 1, ry0:ry1 + 1]
        trues = S[:, rx0:rx1 + 1, ry0:ry1 + 1]
        qerr.append((trues - preds).ravel())
        if param["HS_regular"]:
            regu.append(jnp.abs(preds - jnp.mean(preds, axis=(1, 2), keepdims=True)).ravel())
    l_hsd = jnp.mean(jnp.abs(jnp.concatenate(qerr)))
    if param["HS_regular"]:
        l_hsd = l_hsd + jnp.mean(jnp.concatenate(regu))

    if epoch < 500:
        return l_hsd
    s2 = sigma ** 2
    total = 0.0
    total += 0.5 / s2[0] * l_inner + jnp.log(s2[0] + 1)
    total += 0.5 / s2[1] * l_neu + jnp.log(s2[1] + 1)
    total += 0.5 / s2[2] * l_rad + jnp.log(s2[2] + 1)
    total += 0.5 / s2[4] * l_conv + jnp.log(s2[4] + 1)
    total += 0.5 / s2[5] * l_hsd + jnp.log(s2[5] + 1)
    return total


if __name__ == "__main__":
    B, H, W = 2, 64, 64   # W >= 54 required by the hard-coded mixBC slice 52:-1
    param = {
        "mesh_size": [0.01, 0.01],
        "BCs": ["Convection", "Neumann", "Radiation", "Dirichlet"],
        "BC_regular": True,
        "HS_regular": True,
        "HS_region": [[[0.10, 0.25], [0.30, 0.45]],
                      [[0.35, 0.50], [0.05, 0.20]]],
        "Convective coe": 10.0,
        "Heat Transfer Rate": 50.0,
        "T_a": 25.0,
        "q": 1000.0,
        "Emissivity": 0.8,
        "device": None,
    }

    key = jax.random.PRNGKey(0)
    k_sigma, k_out, k_hsd = jax.random.split(key, 3)
    out = 25.0 + 10.0 * jax.random.normal(k_out, (B, 1, H, W), dtype=jnp.float32)
    HSD = 25.0 + 10.0 * jax.random.normal(k_hsd, (B, H, W), dtype=jnp.float32)

    mod = UncertaintyLossPallas(param, k_sigma)   # mixBC gated off (dead in forward)

    # epoch >= 500 branch (uncertainty-weighted sum of losses)
    loss = jax.block_until_ready(mod.forward(HSD, out, 600))
    ref = _reference_forward(HSD, out, mod.sigma, param, 600)
    np.testing.assert_allclose(np.asarray(loss), np.asarray(ref), rtol=2e-3, atol=1e-3)

    # epoch < 500 branch (pure heat-source data loss); reuses the cached jitted kernel.
    loss_warm = jax.block_until_ready(mod.forward(HSD, out, 100))
    ref_warm = _reference_forward(HSD, out, mod.sigma, param, 100)
    np.testing.assert_allclose(np.asarray(loss_warm), np.asarray(ref_warm),
                               rtol=2e-3, atol=1e-3)

    # Also exercise the (optional, forward-inert) mixBC path once.
    mod_mix = UncertaintyLossPallas(param, k_sigma, compute_mixbc=True)
    loss_mix = jax.block_until_ready(mod_mix.forward(HSD, out, 600))
    np.testing.assert_allclose(np.asarray(loss_mix), np.asarray(ref),
                               rtol=2e-3, atol=1e-3)

    print("KERNEL_OK")
</pallas_src>

<mosaic_0001>
module attributes {stable_mosaic.version = 11 : i64} {
  func.func @kernel(%arg0: i32, %arg1: memref<1x1x64x64xf32, #tpu.memory_space<vmem>>, %arg2: memref<1x64x64xf32, #tpu.memory_space<vmem>>, %arg3: memref<1x8x128xf32, #tpu.memory_space<vmem>>) attributes {dimension_semantics = [#tpu.dimension_semantics<parallel>], iteration_bounds = array<i64: 2>, scalar_prefetch = 0 : i64, scratch_operands = 0 : i64, tpu.core_type = #tpu.core_type<tc>, window_params = [{transform_indices = @transform_0, window_bounds = array<i64: 1, 1, 64, 64>}, {transform_indices = @transform_1, window_bounds = array<i64: 1, 64, 64>}, {transform_indices = @transform_2, window_bounds = array<i64: 1, 8, 128>}]} {
    %c0 = arith.constant 0 : index
    %c0_0 = arith.constant 0 : index
    %c0_1 = arith.constant 0 : index
    %c0_2 = arith.constant 0 : index
    %0 = vector.load %arg1[%c0, %c0_0, %c0_1, %c0_2] : memref<1x1x64x64xf32, #tpu.memory_space<vmem>>, vector<1x1x64x64xf32>
    %1 = vector.shape_cast %0 : vector<1x1x64x64xf32> to vector<64x64xf32>
    %2 = tpu.iota {dimensions = array<i32: 0>} : vector<64x64xi32>
    %3 = tpu.iota {dimensions = array<i32: 1>} : vector<64x64xi32>
    %c1_i32 = arith.constant 1 : i32
    %4 = tpu.dynamic_rotate %1 by %c1_i32 dim 0 : vector<64x64xf32>, i32 -> vector<64x64xf32>
    %c63_i32 = arith.constant 63 : i32
    %5 = tpu.dynamic_rotate %1 by %c63_i32 dim 0 : vector<64x64xf32>, i32 -> vector<64x64xf32>
    %6 = arith.addf %4, %5 : vector<64x64xf32>
    %c1_i32_3 = arith.constant 1 : i32
    %7 = tpu.dynamic_rotate %1 by %c1_i32_3 dim 1 : vector<64x64xf32>, i32 -> vector<64x64xf32>
    %c63_i32_4 = arith.constant 63 : i32
    %8 = tpu.dynamic_rotate %1 by %c63_i32_4 dim 1 : vector<64x64xf32>, i32 -> vector<64x64xf32>
    %9 = arith.addf %7, %8 : vector<64x64xf32>
    %cst = arith.constant 9.99999974E-5 : f32
    %10 = vector.broadcast %cst : f32 to vector<64x64xf32>
    %11 = arith.mulf %10, %6 : vector<64x64xf32>
    %cst_5 = arith.constant 9.99999974E-5 : f32
    %12 = vector.broadcast %cst_5 : f32 to vector<64x64xf32>
    %13 = arith.mulf %12, %9 : vector<64x64xf32>
    %14 = arith.addf %11, %13 : vector<64x64xf32>
    %cst_6 = arith.constant 4.000000e-04 : f32
    %15 = vector.broadcast %cst_6 : f32 to vector<64x64xf32>
    %16 = arith.mulf %15, %1 : vector<64x64xf32>
    %17 = arith.subf %14, %16 : vector<64x64xf32>
    %c1_i32_7 = arith.constant 1 : i32
    %18 = vector.broadcast %c1_i32_7 : i32 to vector<64x64xi32>
    %19 = arith.cmpi sge, %2, %18 : vector<64x64xi32>
    %c62_i32 = arith.constant 62 : i32
    %20 = vector.broadcast %c62_i32 : i32 to vector<64x64xi32>
    %21 = arith.cmpi sle, %2, %20 : vector<64x64xi32>
    %22 = arith.andi %19, %21 : vector<64x64xi1>
    %c1_i32_8 = arith.constant 1 : i32
    %23 = vector.broadcast %c1_i32_8 : i32 to vector<64x64xi32>
    %24 = arith.cmpi sge, %3, %23 : vector<64x64xi32>
    %25 = arith.andi %22, %24 : vector<64x64xi1>
    %c62_i32_9 = arith.constant 62 : i32
    %26 = vector.broadcast %c62_i32_9 : i32 to vector<64x64xi32>
    %27 = arith.cmpi sle, %3, %26 : vector<64x64xi32>
    %28 = arith.andi %25, %27 : vector<64x64xi1>
    %29 = math.absf %17 : vector<64x64xf32>
    %cst_10 = arith.constant 0.000000e+00 : f32
    %30 = vector.broadcast %cst_10 : f32 to vector<64x64xf32>
    %31 = arith.select %28, %29, %30 : vector<64x64xi1>, vector<64x64xf32>
    %32 = vector.shape_cast %31 : vector<64x64xf32> to vector<1x64x64xf32>
    %cst_11 = arith.constant dense<0.000000e+00> : vector<1xf32>
    %33 = vector.multi_reduction <add>, %32, %cst_11 [1, 2] : vector<1x64x64xf32> to vector<1xf32>
    %34 = vector.shape_cast %33 : vector<1xf32> to vector<1x1x1xf32>
    %35 = vector.extract %34[0, 0, 0] : f32 from vector<1x1x1xf32>
    %36 = tpu.iota {dimensions = array<i32: 1>} : vector<1x64xi32>
    %37 = tpu.iota {dimensions = array<i32: 1>} : vector<1x64xi32>
    %c1_i32_12 = arith.constant 1 : i32
    %38 = vector.broadcast %c1_i32_12 : i32 to vector<1x64xi32>
    %39 = arith.cmpi sge, %36, %38 : vector<1x64xi32>
    %c62_i32_13 = arith.constant 62 : i32
    %40 = vector.broadcast %c62_i32_13 : i32 to vector<1x64xi32>
    %41 = arith.cmpi sle, %36, %40 : vector<1x64xi32>
    %42 = arith.andi %39, %41 : vector<1x64xi1>
    %c1_i32_14 = arith.constant 1 : i32
    %43 = vector.broadcast %c1_i32_14 : i32 to vector<1x64xi32>
    %44 = arith.cmpi sge, %37, %43 : vector<1x64xi32>
    %c62_i32_15 = arith.constant 62 : i32
    %45 = vector.broadcast %c62_i32_15 : i32 to vector<1x64xi32>
    %46 = arith.cmpi sle, %37, %45 : vector<1x64xi32>
    %47 = arith.andi %44, %46 : vector<1x64xi1>
    %48 = tpu.transpose %1, [1, 0] : vector<64x64xf32> -> vector<64x64xf32>
    %49 = vector.extract_strided_slice %48 {offsets = [63, 0], sizes = [1, 64], strides = [1, 1]} : vector<64x64xf32> to vector<1x64xf32>
    %50 = vector.extract_strided_slice %48 {offsets = [62, 0], sizes = [1, 64], strides = [1, 1]} : vector<64x64xf32> to vector<1x64xf32>
    %c1_i32_16 = arith.constant 1 : i32
    %51 = tpu.dynamic_rotate %49 by %c1_i32_16 dim 1 : vector<1x64xf32>, i32 -> vector<1x64xf32>
    %c63_i32_17 = arith.constant 63 : i32
    %52 = tpu.dynamic_rotate %49 by %c63_i32_17 dim 1 : vector<1x64xf32>, i32 -> vector<1x64xf32>
    %53 = arith.addf %51, %52 : vector<1x64xf32>
    %cst_18 = arith.constant 4.004000e+00 : f32
    %54 = vector.broadcast %cst_18 : f32 to vector<1x64xf32>
    %55 = arith.mulf %54, %49 : vector<1x64xf32>
    %cst_19 = arith.constant 1.000000e+00 : f32
    %56 = vector.broadcast %cst_19 : f32 to vector<1x64xf32>
    %57 = arith.mulf %56, %53 : vector<1x64xf32>
    %58 = arith.subf %55, %57 : vector<1x64xf32>
    %cst_20 = arith.constant 2.000000e+00 : f32
    %59 = vector.broadcast %cst_20 : f32 to vector<1x64xf32>
    %60 = arith.mulf %59, %50 : vector<1x64xf32>
    %61 = arith.subf %58, %60 : vector<1x64xf32>
    %cst_21 = arith.constant 1.000000e-01 : f32
    %62 = vector.broadcast %cst_21 : f32 to vector<1x64xf32>
    %63 = arith.subf %61, %62 : vector<1x64xf32>
    %64 = math.absf %63 : vector<1x64xf32>
    %cst_22 = arith.constant 0.000000e+00 : f32
    %65 = vector.broadcast %cst_22 : f32 to vector<1x64xf32>
    %66 = arith.select %47, %64, %65 : vector<1x64xi1>, vector<1x64xf32>
    %67 = vector.shape_cast %66 : vector<1x64xf32> to vector<1x1x64xf32>
    %cst_23 = arith.constant dense<0.000000e+00> : vector<1xf32>
    %68 = vector.multi_reduction <add>, %67, %cst_23 [1, 2] : vector<1x1x64xf32> to vector<1xf32>
    %69 = vector.shape_cast %68 : vector<1xf32> to vector<1x1x1xf32>
    %70 = vector.extract %69[0, 0, 0] : f32 from vector<1x1x1xf32>
    %cst_24 = arith.constant 0.000000e+00 : f32
    %71 = arith.addf %cst_24, %70 : f32
    %72 = arith.subf %49, %50 : vector<1x64xf32>
    %cst_25 = arith.constant 0.00999999977 : f32
    %73 = vector.broadcast %cst_25 : f32 to vector<1x64xf32>
    %74 = arith.divf %72, %73 : vector<1x64xf32>
    %cst_26 = arith.constant -2.000000e+02 : f32
    %75 = vector.broadcast %cst_26 : f32 to vector<1x64xf32>
    %76 = arith.mulf %75, %74 : vector<1x64xf32>
    %77 = arith.mulf %76, %74 : vector<1x64xf32>
    %78 = math.exp %77 : vector<1x64xf32>
    %79 = vector.shape_cast %78 : vector<1x64xf32> to vector<1x1x64xf32>
    %cst_27 = arith.constant dense<0.000000e+00> : vector<1xf32>
    %80 = vector.multi_reduction <add>, %79, %cst_27 [1, 2] : vector<1x1x64xf32> to vector<1xf32>
    %81 = vector.shape_cast %80 : vector<1xf32> to vector<1x1x1xf32>
    %82 = vector.extract %81[0, 0, 0] : f32 from vector<1x1x1xf32>
    %cst_28 = arith.constant 0.000000e+00 : f32
    %83 = arith.addf %cst_28, %82 : f32
    %84 = vector.extract_strided_slice %48 {offsets = [0, 0], sizes = [1, 64], strides = [1, 1]} : vector<64x64xf32> to vector<1x64xf32>
    %85 = vector.extract_strided_slice %48 {offsets = [1, 0], sizes = [1, 64], strides = [1, 1]} : vector<64x64xf32> to vector<1x64xf32>
    %c1_i32_29 = arith.constant 1 : i32
    %86 = tpu.dynamic_rotate %84 by %c1_i32_29 dim 1 : vector<1x64xf32>, i32 -> vector<1x64xf32>
    %c63_i32_30 = arith.constant 63 : i32
    %87 = tpu.dynamic_rotate %84 by %c63_i32_30 dim 1 : vector<1x64xf32>, i32 -> vector<1x64xf32>
    %88 = arith.addf %86, %87 : vector<1x64xf32>
    %cst_31 = arith.constant 4.000000e+00 : f32
    %89 = vector.broadcast %cst_31 : f32 to vector<1x64xf32>
    %90 = arith.mulf %89, %84 : vector<1x64xf32>
    %cst_32 = arith.constant 2.000000e+00 : f32
    %91 = vector.broadcast %cst_32 : f32 to vector<1x64xf32>
    %92 = arith.mulf %91, %85 : vector<1x64xf32>
    %93 = arith.subf %90, %92 : vector<1x64xf32>
    %cst_33 = arith.constant 1.000000e+00 : f32
    %94 = vector.broadcast %cst_33 : f32 to vector<1x64xf32>
    %95 = arith.mulf %94, %88 : vector<1x64xf32>
    %96 = arith.subf %93, %95 : vector<1x64xf32>
    %cst_34 = arith.constant 4.000000e-01 : f32
    %97 = vector.broadcast %cst_34 : f32 to vector<1x64xf32>
    %98 = arith.subf %96, %97 : vector<1x64xf32>
    %99 = math.absf %98 : vector<1x64xf32>
    %cst_35 = arith.constant 0.000000e+00 : f32
    %100 = vector.broadcast %cst_35 : f32 to vector<1x64xf32>
    %101 = arith.select %47, %99, %100 : vector<1x64xi1>, vector<1x64xf32>
    %102 = vector.shape_cast %101 : vector<1x64xf32> to vector<1x1x64xf32>
    %cst_36 = arith.constant dense<0.000000e+00> : vector<1xf32>
    %103 = vector.multi_reduction <add>, %102, %cst_36 [1, 2] : vector<1x1x64xf32> to vector<1xf32>
    %104 = vector.shape_cast %103 : vector<1xf32> to vector<1x1x1xf32>
    %105 = vector.extract %104[0, 0, 0] : f32 from vector<1x1x1xf32>
    %cst_37 = arith.constant 0.000000e+00 : f32
    %106 = arith.addf %cst_37, %105 : f32
    %107 = vector.extract_strided_slice %1 {offsets = [0, 0], sizes = [1, 64], strides = [1, 1]} : vector<64x64xf32> to vector<1x64xf32>
    %108 = vector.extract_strided_slice %1 {offsets = [1, 0], sizes = [1, 64], strides = [1, 1]} : vector<64x64xf32> to vector<1x64xf32>
    %c1_i32_38 = arith.constant 1 : i32
    %109 = tpu.dynamic_rotate %107 by %c1_i32_38 dim 1 : vector<1x64xf32>, i32 -> vector<1x64xf32>
    %c63_i32_39 = arith.constant 63 : i32
    %110 = tpu.dynamic_rotate %107 by %c63_i32_39 dim 1 : vector<1x64xf32>, i32 -> vector<1x64xf32>
    %111 = arith.addf %109, %110 : vector<1x64xf32>
    %cst_40 = arith.constant -2.731500e+02 : f32
    %112 = vector.broadcast %cst_40 : f32 to vector<1x64xf32>
    %113 = arith.subf %107, %112 : vector<1x64xf32>
    %114 = arith.mulf %113, %113 : vector<1x64xf32>
    %115 = arith.mulf %113, %113 : vector<1x64xf32>
    %116 = arith.mulf %114, %115 : vector<1x64xf32>
    %cst_41 = arith.constant 2.000000e+00 : f32
    %117 = vector.broadcast %cst_41 : f32 to vector<1x64xf32>
    %118 = arith.mulf %117, %108 : vector<1x64xf32>
    %cst_42 = arith.constant 4.000000e+00 : f32
    %119 = vector.broadcast %cst_42 : f32 to vector<1x64xf32>
    %120 = arith.mulf %119, %107 : vector<1x64xf32>
    %121 = arith.subf %118, %120 : vector<1x64xf32>
    %cst_43 = arith.constant 1.000000e+00 : f32
    %122 = vector.broadcast %cst_43 : f32 to vector<1x64xf32>
    %123 = arith.mulf %122, %111 : vector<1x64xf32>
    %124 = arith.addf %121, %123 : vector<1x64xf32>
    %cst_44 = arith.constant 7.90204058E+9 : f32
    %125 = vector.broadcast %cst_44 : f32 to vector<1x64xf32>
    %126 = arith.subf %116, %125 : vector<1x64xf32>
    %cst_45 = arith.constant 1.814400e-11 : f32
    %127 = vector.broadcast %cst_45 : f32 to vector<1x64xf32>
    %128 = arith.mulf %127, %126 : vector<1x64xf32>
    %129 = arith.subf %124, %128 : vector<1x64xf32>
    %130 = math.absf %129 : vector<1x64xf32>
    %cst_46 = arith.constant 0.000000e+00 : f32
    %131 = vector.broadcast %cst_46 : f32 to vector<1x64xf32>
    %132 = arith.select %42, %130, %131 : vector<1x64xi1>, vector<1x64xf32>
    %133 = vector.shape_cast %132 : vector<1x64xf32> to vector<1x1x64xf32>
    %cst_47 = arith.constant dense<0.000000e+00> : vector<1xf32>
    %134 = vector.multi_reduction <add>, %133, %cst_47 [1, 2] : vector<1x1x64xf32> to vector<1xf32>
    %135 = vector.shape_cast %134 : vector<1xf32> to vector<1x1x1xf32>
    %136 = vector.extract %135[0, 0, 0] : f32 from vector<1x1x1xf32>
    %cst_48 = arith.constant 0.000000e+00 : f32
    %137 = arith.addf %cst_48, %136 : f32
    %cst_49 = arith.constant 0.000000e+00 : f32
    %138 = vector.broadcast %cst_49 : f32 to vector<64x64xf32>
    %c10_i32 = arith.constant 10 : i32
    %139 = vector.broadcast %c10_i32 : i32 to vector<64x64xi32>
    %140 = arith.cmpi sge, %2, %139 : vector<64x64xi32>
    %c25_i32 = arith.constant 25 : i32
    %141 = vector.broadcast %c25_i32 : i32 to vector<64x64xi32>
    %142 = arith.cmpi sle, %2, %141 : vector<64x64xi32>
    %143 = arith.andi %140, %142 : vector<64x64xi1>
    %c30_i32 = arith.constant 30 : i32
    %144 = vector.broadcast %c30_i32 : i32 to vector<64x64xi32>
    %145 = arith.cmpi sge, %3, %144 : vector<64x64xi32>
    %146 = arith.andi %143, %145 : vector<64x64xi1>
    %c45_i32 = arith.constant 45 : i32
    %147 = vector.broadcast %c45_i32 : i32 to vector<64x64xi32>
    %148 = arith.cmpi sle, %3, %147 : vector<64x64xi32>
    %149 = arith.andi %146, %148 : vector<64x64xi1>
    %150 = arith.extui %149 : vector<64x64xi1> to vector<64x64xi32>
    %151 = arith.sitofp %150 : vector<64x64xi32> to vector<64x64xf32>
    %152 = arith.addf %138, %151 : vector<64x64xf32>
    %153 = arith.mulf %1, %151 : vector<64x64xf32>
    %154 = vector.shape_cast %153 : vector<64x64xf32> to vector<1x64x64xf32>
    %cst_50 = arith.constant dense<0.000000e+00> : vector<1xf32>
    %155 = vector.multi_reduction <add>, %154, %cst_50 [1, 2] : vector<1x64x64xf32> to vector<1xf32>
    %156 = vector.shape_cast %155 : vector<1xf32> to vector<1x1x1xf32>
    %157 = vector.extract %156[0, 0, 0] : f32 from vector<1x1x1xf32>
    %cst_51 = arith.constant 2.560000e+02 : f32
    %158 = arith.divf %157, %cst_51 : f32
    %159 = vector.broadcast %158 : f32 to vector<64x64xf32>
    %160 = arith.subf %1, %159 : vector<64x64xf32>
    %161 = math.absf %160 : vector<64x64xf32>
    %162 = arith.mulf %161, %151 : vector<64x64xf32>
    %163 = vector.shape_cast %162 : vector<64x64xf32> to vector<1x64x64xf32>
    %cst_52 = arith.constant dense<0.000000e+00> : vector<1xf32>
    %164 = vector.multi_reduction <add>, %163, %cst_52 [1, 2] : vector<1x64x64xf32> to vector<1xf32>
    %165 = vector.shape_cast %164 : vector<1xf32> to vector<1x1x1xf32>
    %166 = vector.extract %165[0, 0, 0] : f32 from vector<1x1x1xf32>
    %cst_53 = arith.constant 0.000000e+00 : f32
    %167 = arith.addf %cst_53, %166 : f32
    %c35_i32 = arith.constant 35 : i32
    %168 = vector.broadcast %c35_i32 : i32 to vector<64x64xi32>
    %169 = arith.cmpi sge, %2, %168 : vector<64x64xi32>
    %c50_i32 = arith.constant 50 : i32
    %170 = vector.broadcast %c50_i32 : i32 to vector<64x64xi32>
    %171 = arith.cmpi sle, %2, %170 : vector<64x64xi32>
    %172 = arith.andi %169, %171 : vector<64x64xi1>
    %c5_i32 = arith.constant 5 : i32
    %173 = vector.broadcast %c5_i32 : i32 to vector<64x64xi32>
    %174 = arith.cmpi sge, %3, %173 : vector<64x64xi32>
    %175 = arith.andi %172, %174 : vector<64x64xi1>
    %c20_i32 = arith.constant 20 : i32
    %176 = vector.broadcast %c20_i32 : i32 to vector<64x64xi32>
    %177 = arith.cmpi sle, %3, %176 : vector<64x64xi32>
    %178 = arith.andi %175, %177 : vector<64x64xi1>
    %179 = arith.extui %178 : vector<64x64xi1> to vector<64x64xi32>
    %180 = arith.sitofp %179 : vector<64x64xi32> to vector<64x64xf32>
    %181 = arith.addf %152, %180 : vector<64x64xf32>
    %182 = arith.mulf %1, %180 : vector<64x64xf32>
    %183 = vector.shape_cast %182 : vector<64x64xf32> to vector<1x64x64xf32>
    %cst_54 = arith.constant dense<0.000000e+00> : vector<1xf32>
    %184 = vector.multi_reduction <add>, %183, %cst_54 [1, 2] : vector<1x64x64xf32> to vector<1xf32>
    %185 = vector.shape_cast %184 : vector<1xf32> to vector<1x1x1xf32>
    %186 = vector.extract %185[0, 0, 0] : f32 from vector<1x1x1xf32>
    %cst_55 = arith.constant 2.560000e+02 : f32
    %187 = arith.divf %186, %cst_55 : f32
    %188 = vector.broadcast %187 : f32 to vector<64x64xf32>
    %189 = arith.subf %1, %188 : vector<64x64xf32>
    %190 = math.absf %189 : vector<64x64xf32>
    %191 = arith.mulf %190, %180 : vector<64x64xf32>
    %192 = vector.shape_cast %191 : vector<64x64xf32> to vector<1x64x64xf32>
    %cst_56 = arith.constant dense<0.000000e+00> : vector<1xf32>
    %193 = vector.multi_reduction <add>, %192, %cst_56 [1, 2] : vector<1x64x64xf32> to vector<1xf32>
    %194 = vector.shape_cast %193 : vector<1xf32> to vector<1x1x1xf32>
    %195 = vector.extract %194[0, 0, 0] : f32 from vector<1x1x1xf32>
    %196 = arith.addf %167, %195 : f32
    %c0_57 = arith.constant 0 : index
    %c0_58 = arith.constant 0 : index
    %c0_59 = arith.constant 0 : index
    %197 = vector.load %arg2[%c0_57, %c0_58, %c0_59] : memref<1x64x64xf32, #tpu.memory_space<vmem>>, vector<1x64x64xf32>
    %198 = vector.shape_cast %197 : vector<1x64x64xf32> to vector<64x64xf32>
    %199 = arith.subf %198, %1 : vector<64x64xf32>
    %200 = math.absf %199 : vector<64x64xf32>
    %201 = arith.mulf %200, %181 : vector<64x64xf32>
    %202 = vector.shape_cast %201 : vector<64x64xf32> to vector<1x64x64xf32>
    %cst_60 = arith.constant dense<0.000000e+00> : vector<1xf32>
    %203 = vector.multi_reduction <add>, %202, %cst_60 [1, 2] : vector<1x64x64xf32> to vector<1xf32>
    %204 = vector.shape_cast %203 : vector<1xf32> to vector<1x1x1xf32>
    %205 = vector.extract %204[0, 0, 0] : f32 from vector<1x1x1xf32>
    %206 = tpu.iota {dimensions = array<i32: 1>} : vector<8x128xi32>
    %207 = tpu.iota {dimensions = array<i32: 0>} : vector<8x128xi32>
    %c0_i32 = arith.constant 0 : i32
    %208 = vector.broadcast %c0_i32 : i32 to vector<8x128xi32>
    %209 = arith.cmpi eq, %207, %208 : vector<8x128xi32>
    %cst_61 = arith.constant 0.000000e+00 : f32
    %210 = vector.broadcast %cst_61 : f32 to vector<8x128xf32>
    %c0_i32_62 = arith.constant 0 : i32
    %211 = vector.broadcast %c0_i32_62 : i32 to vector<8x128xi32>
    %212 = arith.cmpi eq, %206, %211 : vector<8x128xi32>
    %213 = arith.andi %209, %212 : vector<8x128xi1>
    %214 = vector.broadcast %35 : f32 to vector<8x128xf32>
    %215 = arith.select %213, %214, %210 : vector<8x128xi1>, vector<8x128xf32>
    %c1_i32_63 = arith.constant 1 : i32
    %216 = vector.broadcast %c1_i32_63 : i32 to vector<8x128xi32>
    %217 = arith.cmpi eq, %206, %216 : vector<8x128xi32>
    %218 = arith.andi %209, %217 : vector<8x128xi1>
    %219 = vector.broadcast %106 : f32 to vector<8x128xf32>
    %220 = arith.select %218, %219, %215 : vector<8x128xi1>, vector<8x128xf32>
    %c2_i32 = arith.constant 2 : i32
    %221 = vector.broadcast %c2_i32 : i32 to vector<8x128xi32>
    %222 = arith.cmpi eq, %206, %221 : vector<8x128xi32>
    %223 = arith.andi %209, %222 : vector<8x128xi1>
    %224 = vector.broadcast %137 : f32 to vector<8x128xf32>
    %225 = arith.select %223, %224, %220 : vector<8x128xi1>, vector<8x128xf32>
    %c3_i32 = arith.constant 3 : i32
    %226 = vector.broadcast %c3_i32 : i32 to vector<8x128xi32>
    %227 = arith.cmpi eq, %206, %226 : vector<8x128xi32>
    %228 = arith.andi %209, %227 : vector<8x128xi1>
    %229 = vector.broadcast %71 : f32 to vector<8x128xf32>
    %230 = arith.select %228, %229, %225 : vector<8x128xi1>, vector<8x128xf32>
    %c4_i32 = arith.constant 4 : i32
    %231 = vector.broadcast %c4_i32 : i32 to vector<8x128xi32>
    %232 = arith.cmpi eq, %206, %231 : vector<8x128xi32>
    %233 = arith.andi %209, %232 : vector<8x128xi1>
    %234 = vector.broadcast %83 : f32 to vector<8x128xf32>
    %235 = arith.select %233, %234, %230 : vector<8x128xi1>, vector<8x128xf32>
    %c7_i32 = arith.constant 7 : i32
    %236 = vector.broadcast %c7_i32 : i32 to vector<8x128xi32>
    %237 = arith.cmpi eq, %206, %236 : vector<8x128xi32>
    %238 = arith.andi %209, %237 : vector<8x128xi1>
    %239 = vector.broadcast %205 : f32 to vector<8x128xf32>
    %240 = arith.select %238, %239, %235 : vector<8x128xi1>, vector<8x128xf32>
    %c8_i32 = arith.constant 8 : i32
    %241 = vector.broadcast %c8_i32 : i32 to vector<8x128xi32>
    %242 = arith.cmpi eq, %206, %241 : vector<8x128xi32>
    %243 = arith.andi %209, %242 : vector<8x128xi1>
    %244 = vector.broadcast %196 : f32 to vector<8x128xf32>
    %245 = arith.select %243, %244, %240 : vector<8x128xi1>, vector<8x128xf32>
    %c0_64 = arith.constant 0 : index
    %c0_65 = arith.constant 0 : index
    %c0_66 = arith.constant 0 : index
    %246 = vector.load %arg3[%c0_64, %c0_65, %c0_66] : memref<1x8x128xf32, #tpu.memory_space<vmem>>, vector<1x8x128xf32>
    %247 = vector.shape_cast %246 : vector<1x8x128xf32> to vector<8x128xf32>
    %248 = vector.shape_cast %245 : vector<8x128xf32> to vector<1x8x128xf32>
    tpu.vector_store %arg3[%c0_64, %c0_65, %c0_66], %248 {strides = array<i32>} : memref<1x8x128xf32, #tpu.memory_space<vmem>>, vector<1x8x128xf32>,
    return
  }
  func.func @transform_0(%arg0: i32) -> (i32, i32, i32, i32) {
    %c0_i32 = arith.constant 0 : i32
    %c0_i32_0 = arith.constant 0 : i32
    %c0_i32_1 = arith.constant 0 : i32
    %c0_i32_2 = arith.constant 0 : i32
    return %arg0, %c0_i32, %c0_i32_0, %c0_i32_1 : i32, i32, i32, i32
  }
  func.func @transform_1(%arg0: i32) -> (i32, i32, i32) {
    %c0_i32 = arith.constant 0 : i32
    %c0_i32_0 = arith.constant 0 : i32
    %c0_i32_1 = arith.constant 0 : i32
    return %arg0, %c0_i32, %c0_i32_0 : i32, i32, i32
  }
  func.func @transform_2(%arg0: i32) -> (i32, i32, i32) {
    %c0_i32 = arith.constant 0 : i32
    %c0_i32_0 = arith.constant 0 : i32
    %c0_i32_1 = arith.constant 0 : i32
    return %arg0, %c0_i32, %c0_i32_0 : i32, i32, i32
  }
}

</mosaic_0001>

<bundles_post_ra>
// kernel: components.1
= control target key start
LH: loop header
LB: loop body
LE: loop exit
PB: predicated region body
PF: predicated region fallthrough
CT: control target
= control target key end

     0   :  { %7 = vsyncpa [#allocation3], 0  ;;  %s2016_s0 = inlined_call_operand.hbm [shape: f32[2,1,64,64], index: 0, kind: input, shape index: {}]   ;;  %s2017_s1 = inlined_call_operand.hbm [shape: f32[2,64,64], index: 1, kind: input, shape index: {}]   ;;  %s2018_s2 = inlined_call_operand.vmem [shape: f32[2,8,128], index: 2, kind: output, shape index: {}]  }
   0x1   :  { %9 = vsyncpa [#allocation3 + $0x1], 0 }
   0x2   :  { %10 = vsyncpa [#allocation5], 0 }
   0x3   :  { %12 = vsyncpa [#allocation5 + $0x1], 0  ;;  %s1380_s9 = smov 0   ;;  %s1382_s10 = smov 0  }
   0x4   :  { %s1384_s11 = smov 0   ;;  %s1386_s12 = smov 0  }
   0x5 LB: > { %s1399_s13 = sadd.s32 4294967295, %s1355_s12   ;;  %s1402_s14 = sadd.s32 1, %s1355_s12   ;;  %s1355_s12 = sphi %s1386_s12, %s2036_s12   ;;  %s1351_s11 = sphi %s1384_s11, %s2035_s11   ;;  %s1347_s10 = sphi %s1382_s10, %s2034_s10   ;;  %s1343_s9 = sphi %s1380_s9, %s2033_s9  }
   0x6   : > { %s22_s15 = ssub.s32 %s1355_s12, %s1402_s14  ;;  %s25_s16 = sadd.s32 1, %s1351_s11 }
   0x7   : > { %p23_p0 = scmp.eq.s32.totalorder %s22_s15, 0  ;;  %p32_p1 = scmp.ne.s32.totalorder %s1351_s11, %s1347_s10 }
   0x8   : > { %p33_p2 = scmp.eq.s32.totalorder %s1355_s12, 0  ;;  %p38_p3 = scmp.ne.s32.totalorder %s1347_s10, %s1343_s9 }
   0x9   : > { %s1412_s17 = scalar_select %p23_p0, %s1351_s11, %s25_s16  }
   0xa   : > { %p34_p4 = por %p33_p2, %p32_p1  ;;  %p39_p5 = scmp.eq.s32.totalorder %s1399_s13, 0 }
   0xb   : > { %p1212_p6 = scmp.lt.s32.totalorder %s1355_s12, 2  ;;  %s1421_s19 = sand.u32 1, %s1351_s11  }
   0xc   : > { %p1416_p7 = por %p39_p5, %p38_p3  ;;  %s1157_s20 = sshll.u32 %s1421_s19, 6 }
   0xd   : > { %s1179_s21 = sshll.u32 %s1355_s12, 10  ;;  %s118_s25 = scalar_lea.vmem [#allocation2], %s1157_s20 }
   0xe   : > { %s2020_s18 = scalar_select %p1416_p7, 1, 0 }
   0xf   : > { %s1430_s24 = scalar_lea.hbm %s2016_s0, %s1179_s21  ;;  %s125_s26 = sshll.u32 %s118_s25, 4  ;;  %s1434_s26 = int_to_ptr.vmem [resolvable:$true] %s125_s26 }
  0x10   : > { %p1436_p8 = pnand %p1212_p6, %p34_p4  ;;  %s115_s28 = scalar_lea.sflag [#allocation3], %s1421_s19 }
  0x11   : > { %s1261_s29 = scalar_lea.hbm %s1430_s24, 1024  ;;  %s1266_s4 = scalar_lea.hbm %s2016_s0, 2048 }
  0x12   : > { %p1262_p10 = scmp.ne.s32.totalorder %s1430_s24, %s1261_s29  ;;  %p1263_p11 = pneg %p1436_p8 }
  0x13   : > { %p1267_p0 = scmp.lt.s32.totalorder %s1430_s24, %s2016_s0  ;;  %p1268_p1 = scmp.lt.s32.totalorder %s1266_s4, %s1261_s29 }
  0x14   : > { %p1264_p12 = pnand %p1263_p11, %p1262_p10 }
  0x15   : > { %p1269_p2 = por %p1268_p1, %p1267_p0 }
  0x16   : > { %p1265_p13 = pneg %p1264_p12 }
  0x18   : > { %p1270_p3 = pnand %p1269_p2, %p1265_p13 }
  0x1a   : > { %1273 = shalt.err (!%p1270_p3)
}
  0x1b   : > { %s1274_s7 = scalar_lea.vmem %s1434_s26, 1024  ;;  %s1357_s8 = smov [#allocation2]  }
  0x1c   : > { %p1275_p4 = scmp.ne.s32.totalorder %s1434_s26, %s1274_s7  ;;  %s1279_s9 = sshll.u32 %s1357_s8, 4  ;;  %s1280_s9 = int_to_ptr.vmem [resolvable:$false] %s1279_s9 }
  0x1d   : > { %s1281_s15 = scalar_lea.vmem %s1280_s9, 2048  ;;  %p1282_p10 = scmp.lt.s32.totalorder %s1434_s26, %s1280_s9 }
  0x1e   : > { %p1277_p5 = pnand %p1275_p4, %p1263_p11  ;;  %p1283_p12 = scmp.lt.s32.totalorder %s1281_s15, %s1274_s7 }
  0x20   : > { %p1278_p6 = pneg %p1277_p5  ;;  %p1284_p9 = por %p1283_p12, %p1282_p10 }
  0x22   : > { %p1285_p0 = pnand %p1284_p9, %p1278_p6 }
  0x24   : > { %1288 = shalt.err (!%p1285_p0)
}
  0x25   : > { %s1358_s16 = smov 128   ;;  %s1359_s22 = smov 8  }
  0x26   : > { %1208 = dma.hbm_to_vmem [thread:$0]  (!%p1436_p8), %s1430_s24, 1024, %s1434_s26, %s115_s28, %s1358_s16, %s1358_s16, %s1359_s22  }
  0x27   : > { %p154_p9 = scmp.lt.s32.totalorder %s1355_s12, 3  ;;  %s1477_s29 = scalar_lea.hbm %s2017_s1, %s1179_s21 }
  0x28   : > { %p2022_p13 = scmp.ge.s32.totalorder %s1355_s12, 1  ;;  %s139_s3 = scalar_lea.vmem [#allocation4], %s1157_s20 }
  0x29   : > { %s146_s4 = sshll.u32 %s139_s3, 4  ;;  %s136_s24 = scalar_lea.sflag [#allocation5], %s1421_s19  ;;  %s1487_s4 = int_to_ptr.vmem [resolvable:$true] %s146_s4 }
  0x2a   : > { %p1481_p1 = pnand %p2022_p13, %p154_p9  ;;  %s1289_s26 = scalar_lea.hbm %s1477_s29, 1024 }
  0x2b   : > { %p1290_p2 = scmp.ne.s32.totalorder %s1477_s29, %s1289_s26  ;;  %s1294_s28 = scalar_lea.hbm %s2017_s1, 2048 }
  0x2c   : > { %p1295_p5 = scmp.lt.s32.totalorder %s1477_s29, %s2017_s1  ;;  %p1296_p6 = scmp.lt.s32.totalorder %s1294_s28, %s1289_s26 }
  0x2d   : > { %p1292_p3 = pnand %p1290_p2, %p1263_p11 }
  0x2e   : > { %p1297_p10 = por %p1296_p6, %p1295_p5 }
  0x2f   : > { %p1293_p4 = pneg %p1292_p3 }
  0x31   : > { %p1298_p12 = pnand %p1297_p10, %p1293_p4 }
  0x33   : > { %1301 = shalt.err (!%p1298_p12)
}
  0x34   : > { %s1302_s19 = scalar_lea.vmem %s1487_s4, 1024  ;;  %s1360_s20 = smov [#allocation4]  }
  0x35   : > { %p1303_p0 = scmp.ne.s32.totalorder %s1487_s4, %s1302_s19  ;;  %s1307_s7 = sshll.u32 %s1360_s20, 4  ;;  %s1308_s7 = int_to_ptr.vmem [resolvable:$false] %s1307_s7 }
  0x36   : > { %s1309_s8 = scalar_lea.vmem %s1308_s7, 2048  ;;  %p1310_p2 = scmp.lt.s32.totalorder %s1487_s4, %s1308_s7 }
  0x37   : > { %p1305_p9 = pnand %p1303_p0, %p1263_p11  ;;  %p1311_p3 = scmp.lt.s32.totalorder %s1309_s8, %s1302_s19 }
  0x39   : > { %p1306_p13 = pneg %p1305_p9  ;;  %p1312_p7 = por %p1311_p3, %p1310_p2 }
  0x3b   : > { %p1313_p5 = pnand %p1312_p7, %p1306_p13 }
  0x3d   : > { %1316 = shalt.err (!%p1313_p5)
}
  0x3e   : > { %1211 = dma.hbm_to_vmem [thread:$0]  (!%p1436_p8), %s1477_s29, 1024, %s1487_s4, %s136_s24, %s1358_s16, %s1358_s16, %s1359_s22  }
  0x3f   : > { %158 = sbr.rel (%p1481_p1) target bundleno = 1371 (0x55b), region = 28  ;;  %s160_s9 = sand.u32 (!%p1481_p1), 1, %s1347_s10  }
  0x40   : > { %s1164_s15 = sshll.u32 (!%p1481_p1), %s160_s9, 6  ;;  %s161_s23 = scalar_lea.sflag (!%p1481_p1), [#allocation3], %s160_s9 }
  0x41   : > { %s1518_s25 = scalar_lea.vmem (!%p1481_p1), [#allocation2], %s1164_s15  ;;  %p2024_p7 = scmp.ne.s32.totalorder (!%p1481_p1), %s2020_s18, 0 }
  0x44   : > { %1334 = dma.done.wait (%p2024_p7), %s161_s23, 1024  }
  0x45   : > { %1336 = vsyncadd (%p2024_p7), %s161_s23, 4294966272  ;;  %s170_s27 = scalar_lea.sflag [#allocation5], %s160_s9  ;;  %s1524_s3 = scalar_lea.vmem [#allocation4], %s1164_s15 }
  0x46   : > { %1338 = dma.done.wait (%p2024_p7), %s170_s27, 1024  }
  0x47   : > { %1340 = vsyncadd (%p2024_p7), %s170_s27, 4294966272  ;;  %v1531_v0 = vld [vmem:[%s1518_s25] sm:$0xff]  ;;  %s1361_s16 = smov 64   ;;  %v1537_v1 = vld [vmem:[%s1518_s25 + $0x8] sm:$0xff]  ;;  %vm263_vm0 = vcmask 1048064   ;;  %s1362_s18 = smov 62  }
  0x48   : > { %508 = vxpose.xlu0.b32.start [1/8] (short) (narrow) %v1531_v0, 64  ;;  %264 = vrot.lane.b32.xlu1 %v1531_v0, %s1361_s16  ;;  %v1543_v2 = vld [vmem:[%s1518_s25 + $0x10] sm:$0xff]  ;;  %v1549_v3 = vld [vmem:[%s1518_s25 + $0x18] sm:$0xff]  ;;  %v1555_v4 = vld [vmem:[%s1518_s25 + $0x20] sm:$0xff]  ;;  %s1363_s22 = smov 65   ;;  %vm572_vm1 = vcmask 516096  }
  0x49   : > { %v1561_v5 = vld [vmem:[%s1518_s25 + $0x28] sm:$0xff]  ;;  %v1567_v6 = vld [vmem:[%s1518_s25 + $0x30] sm:$0xff]  ;;  %v1573_v7 = vld [vmem:[%s1518_s25 + $0x38] sm:$0xff]  ;;  %vm482_vm12 = vcmask 523264   ;;  %p198_p8 = scmp.lt.s32.totalorder %s1399_s13, 1 }
  0x4b   : > { %s2038_s13 = smov (!%p198_p8, %s1399_s13), 1 }
  0x4c   : > { %509 = vxpose.xlu0.b32.cont [2/8] (short) (narrow) %v1537_v1, 64  ;;  %267 = vrot.lane.b32.xlu1 %v1537_v1, %s1361_s16  ;;  %s1166_s19 = sshll.u32 %s2038_s13, 3 }
  0x4d   : > { %s201_s23 = scalar_lea.vmem %s2018_s2, %s1166_s19 }
  0x50   : > { %510 = vxpose.xlu0.b32.cont [3/8] (short) (narrow) %v1543_v2, 64  ;;  %270 = vrot.lane.b32.xlu1 %v1543_v2, %s1361_s16 }
  0x54   : > { %511 = vxpose.xlu0.b32.cont [4/8] (short) (narrow) %v1549_v3, 64  ;;  %273 = vrot.lane.b32.xlu1 %v1549_v3, %s1361_s16 }
  0x58   : > { %512 = vxpose.xlu0.b32.cont [5/8] (short) (narrow) %v1555_v4, 64  ;;  %276 = vrot.lane.b32.xlu1 %v1555_v4, %s1361_s16 }
  0x5c   : > { %513 = vxpose.xlu0.b32.cont [6/8] (short) (narrow) %v1561_v5, 64  ;;  %279 = vrot.lane.b32.xlu1 %v1561_v5, %s1361_s16 }
  0x60   : > { %514 = vxpose.xlu0.b32.cont [7/8] (short) (narrow) %v1567_v6, 64  ;;  %282 = vrot.lane.b32.xlu1 %v1567_v6, %s1361_s16 }
  0x64   : > { %515 = vxpose.xlu0.b32.end [8/8] (short) (narrow) %v1573_v7, 64 }
  0x8d   : > { %285 = vrot.lane.b32.xlu0 %v1573_v7, %s1361_s16 }
  0xba   : > { %v265_v14 = vpop.permute.xlu1 %264 }
  0xbb   : > { %v266_v20 = vsel %vm263_vm0, %v265_v14, %v1531_v0 }
  0xbe   : > { %v268_v16 = vpop.permute.xlu1 %267 }
  0xbf   : > { %v269_v22 = vsel %vm263_vm0, %v268_v16, %v1537_v1 }
  0xc2   : > { %v271_v19 = vpop.permute.xlu1 %270 }
  0xc3   : > { %v272_v23 = vsel %vm263_vm0, %v271_v19, %v1543_v2 }
  0xc4   : > { %v1578_v8 = vpop.trf.xlu0 }
  0xc6   : > { %v274_v21 = vpop.permute.xlu1 %273 }
  0xc7   : > { %v275_v25 = vsel %vm263_vm0, %v274_v21, %v1549_v3 }
  0xc8   : > { %v525_v9 = vpop.trf.xlu0 }
  0xca   : > { %v277_v24 = vpop.permute.xlu1 %276 }
  0xcb   : > { %v278_v27 = vsel %vm263_vm0, %v277_v24, %v1555_v4 }
  0xcc   : > { %v526_v10 = vpop.trf.xlu0 }
  0xce   : > { %v280_v26 = vpop.permute.xlu1 %279 }
  0xcf   : > { %v281_v28 = vsel %vm263_vm0, %v280_v26, %v1561_v5 }
  0xd0   : > { %v527_v11 = vpop.trf.xlu0 }
  0xd2   : > { %v283_v29 = vpop.permute.xlu1 %282 }
  0xd3   : > { %v284_v30 = vsel %vm263_vm0, %v283_v29, %v1567_v6 }
  0xd4   : > { %v528_v12 = vpop.trf.xlu0 }
  0xd8   : > { %v529_v13 = vpop.trf.xlu0 }
  0xdc   : > { %v530_v15 = vpop.trf.xlu0 }
  0xe0   : > { %v1580_v17 = vpop.trf.xlu0 }
  0xe1   : > { %v1583_v18 = vrot.slane %v1580_v17, 7 }
  0xe3   : > { %543 = vrot.lane.b32.xlu1 %v1583_v18, %s1361_s16 }
  0xe7   : > { %605 = vrot.lane.b32.xlu1 %v1578_v8, %s1361_s16 }
  0xeb   : > { %288 = vrot.lane.b32.xlu1 %v266_v20, %s1361_s16 }
  0xef   : > { %290 = vrot.lane.b32.xlu1 %v269_v22, %s1361_s16 }
  0xf3   : > { %292 = vrot.lane.b32.xlu1 %v272_v23, %s1361_s16 }
  0xf7   : > { %294 = vrot.lane.b32.xlu1 %v275_v25, %s1361_s16 }
  0xfb   : > { %296 = vrot.lane.b32.xlu1 %v278_v27, %s1361_s16  ;;  %v584_v27 = vsub.f32 %v1580_v17, %v1583_v18 }
  0xff   : > { %298 = vrot.lane.b32.xlu1 %v281_v28, %s1361_s16  ;;  %v286_v32 = vpop.permute.xlu0 %285 }
 0x100   : > { %v287_v34 = vsel %vm263_vm0, %v286_v32, %v1573_v7 }
 0x103   : > { %300 = vrot.lane.b32.xlu1 %v284_v30, %s1361_s16 }
 0x155   : > { %v544_v31 = vpop.permute.xlu1 %543 }
 0x156   : > { %v545_v33 = vsel %vm263_vm0, %v544_v31, %v1583_v18  ;;  %v586_v31 = vmul.f32 100.0, %v584_v27 }
 0x157   : > { %546 = vrot.lane.b32.xlu1 %v545_v33, %s1361_s16 }
 0x159   : > { %v606_v35 = vpop.permute.xlu1 %605 }
 0x15a   : > { %v607_v38 = vsel %vm263_vm0, %v606_v35, %v1578_v8  ;;  %v587_v35 = vmul.f32 -200.0, %v586_v31 }
 0x15b   : > { %302 = vrot.lane.b32.xlu1 %v287_v34, %s1361_s16 }
 0x15d   : > { %v289_v36 = vpop.permute.xlu1 %288 }
 0x15e   : > { %v304_v37 = vsel %vm263_vm0, %v289_v36, %v1531_v0 }
 0x15f   : > { %320 = vrot.lane.b32.xlu0 %v304_v37, %s1362_s18  ;;  %608 = vrot.lane.b32.xlu1 %v607_v38, %s1361_s16 }
 0x161   : > { %v291_v39 = vpop.permute.xlu1 %290 }
 0x162   : > { %v305_v40 = vsel %vm263_vm0, %v291_v39, %v1537_v1 }
 0x163   : > { %322 = vrot.lane.b32.xlu1 %v305_v40, %s1362_s18 }
 0x165   : > { %v293_v41 = vpop.permute.xlu1 %292 }
 0x166   : > { %v306_v42 = vsel %vm263_vm0, %v293_v41, %v1543_v2  ;;  %v210_v41 = vlaneseq }
 0x167   : > { %324 = vrot.lane.b32.xlu0 %v306_v42, %s1362_s18 }
 0x169   : > { %v295_v43 = vpop.permute.xlu1 %294 }
 0x16a   : > { %v307_v44 = vsel %vm263_vm0, %v295_v43, %v1549_v3  ;;  %v222_v43 = vrot.slane %v1537_v1, 7 }
 0x16b   : > { %326 = vrot.lane.b32.xlu1 %v307_v44, %s1362_s18 }
 0x16d   : > { %v297_v45 = vpop.permute.xlu1 %296 }
 0x16e   : > { %v308_v46 = vsel %vm263_vm0, %v297_v45, %v1555_v4  ;;  %v228_v45 = vrot.slane %v1573_v7, 7 }
 0x16f   : > { %328 = vrot.lane.b32.xlu0 %v308_v46, %s1362_s18 }
 0x171   : > { %v299_v47 = vpop.permute.xlu1 %298 }
 0x172   : > { %v309_v48 = vsel %vm263_vm0, %v299_v47, %v1561_v5  ;;  %v239_v47 = vrot.slane %v1537_v1, 1 }
 0x173   : > { %330 = vrot.lane.b32.xlu1 %v309_v48, %s1362_s18 }
 0x175   : > { %v301_v49 = vpop.permute.xlu1 %300 }
 0x176   : > { %v310_v50 = vsel %vm263_vm0, %v301_v49, %v1567_v6  ;;  %v223_v49 = vrot.slane %v1543_v2, 7 }
 0x177   : > { %332 = vrot.lane.b32.xlu0 %v310_v50, %s1362_s18 }
 0x1c9   : > { %v547_v51 = vpop.permute.xlu1 %546 }
 0x1ca   : > { %v548_v52 = vsel %vm263_vm0, %v547_v51, %v1583_v18 }
 0x1cb   : > { %550 = vrot.lane.b32.xlu1 %v548_v52, %s1362_s18 }
 0x1cd   : > { %v303_v53 = vpop.permute.xlu1 %302 }
 0x1ce   : > { %v311_v54 = vsel %vm263_vm0, %v303_v53, %v1573_v7  ;;  %v224_v53 = vrot.slane %v1549_v3, 7 }
 0x1cf   : > { %334 = vrot.lane.b32.xlu0 %v311_v54, %s1362_s18 }
 0x1d1   : > { %v609_v55 = vpop.permute.xlu1 %608  ;;  %v321_v56 = vpop.permute.xlu0 %320 }
 0x1d2   : > { %v344_v57 = vadd.f32 %v321_v56, %v304_v37  ;;  %v610_v58 = vsel %vm263_vm0, %v609_v55, %v1578_v8  ;;  %v588_v37 = vmul.f32 %v587_v35, %v586_v31 }
 0x1d3   : > { %612 = vrot.lane.b32.xlu1 %v610_v58, %s1362_s18 }
 0x1d4   : > { %v360_v59 = vmul.f32 0.0001, %v344_v57  ;;  %v651_v32 = vrot.slane %v344_v57, 7  ;;  %v589_v38 = vmul.f32 1.442695, %v588_v37  ;;  %v1686_v57 = vand.u32 127, %v210_v41 }
 0x1d5   : > { %v323_v60 = vpop.permute.xlu1 %322 }
 0x1d6   : > { %v345_v61 = vadd.f32 %v323_v60, %v305_v40  ;;  %376 = vrot.lane.b32.xlu0 %v360_v59, %s1363_s22  ;;  %1251 = vpow2.f32 %v589_v38  ;;  %v225_v59 = vrot.slane %v1555_v4, 7  ;;  %v243_v60 = vrot.slane %v1561_v5, 1 }
 0x1d7   : > { %vm702_vm5 = vcmp.ge.s32.totalorder %v1686_v57, 30  ;;  %vm711_vm7 = vcmp.le.s32.totalorder %v1686_v57, 45  ;;  %vm448_vm11 = vcmp.ge.s32.totalorder %v1686_v57, 1  ;;  %vm457_vm14 = vcmp.le.s32.totalorder %v1686_v57, 62 }
 0x1d8   : > { %v361_v62 = vmul.f32 0.0001, %v345_v61  ;;  %vm714_vm13 = vmand %vm702_vm5, %vm711_vm7 }
 0x1d9   : > { %v325_v63 = vpop.permute.xlu0 %324 }
 0x1da   : > { %v346_v9 = vadd.f32 %v325_v63, %v306_v42  ;;  %378 = vrot.lane.b32.xlu1 %v361_v62, %s1363_s22  ;;  %v1663_v42 = vshrl.u32 %v210_v41, 7  ;;  %v408_v41 = vmul.f32 0.0004, %v1531_v0 }
 0x1dc   : > { %v362_v10 = vmul.f32 0.0001, %v346_v9  ;;  %vm229_vm2 = vcmp.lt.s32.totalorder %v1663_v42, 1  ;;  %vm246_vm3 = vcmp.lt.s32.totalorder %v1663_v42, 7  ;;  %v212_v56 = vadd.s32 8, %v1663_v42 }
 0x1dd   : > { %v327_v11 = vpop.permute.xlu1 %326  ;;  %v235_v62 = vsel %vm229_vm2, %v222_v43, %v223_v49  ;;  %v226_v9 = vrot.slane %v1561_v5, 7  ;;  %vm424_vm8 = vcmp.ge.s32.totalorder %v1663_v42, 1 }
 0x1de   : > { %v347_v12 = vadd.f32 %v327_v11, %v307_v44  ;;  %380 = vrot.lane.b32.xlu0 %v362_v10, %s1363_s22  ;;  %v240_v44 = vrot.slane %v1543_v2, 1  ;;  %v234_v10 = vsel %vm229_vm2, %v223_v49, %v224_v53  ;;  %vm679_vm4 = vcmp.ge.s32.totalorder %v212_v56, 10  ;;  %vm1764_vm0 = vmand %vm424_vm8, %vm448_vm11 }
 0x1df   : > { %vm704_vm6 = vmand %vm679_vm4, %vm702_vm5  ;;  %v1364_v49 = vmov 0.0   ;;  %vm853_vm8 = vcmp.ge.s32.totalorder %v1686_v57, 5 }
 0x1e0   : > { %v363_v13 = vmul.f32 0.0001, %v347_v12  ;;  %v252_v51 = vsel %vm246_vm3, %v239_v47, %v240_v44  ;;  %v244_v12 = vrot.slane %v1567_v6, 1  ;;  %vm713_vm9 = vmand %vm704_vm6, %vm711_vm7 }
 0x1e1   : > { %v329_v14 = vpop.permute.xlu0 %328 }
 0x1e2   : > { %v348_v15 = vadd.f32 %v329_v14, %v308_v46  ;;  %382 = vrot.lane.b32.xlu1 %v363_v13, %s1363_s22  ;;  %v221_v46 = vrot.slane %v1531_v0, 7 }
 0x1e3   : > { %v1252_v18 = vpop.eup %1251 }
 0x1e4   : > { %v364_v16 = vmul.f32 0.0001, %v348_v15  ;;  %v592_v39 = vrot.slane %v1252_v18, 7  ;;  %v237_v55 = vsel %vm229_vm2, %v228_v45, %v221_v46  ;;  %v233_v15 = vsel %vm229_vm2, %v224_v53, %v225_v59 }
 0x1e5   : > { %v331_v19 = vpop.permute.xlu1 %330 }
 0x1e6   : > { %v349_v20 = vadd.f32 %v331_v19, %v309_v48  ;;  %384 = vrot.lane.b32.xlu0 %v364_v16, %s1363_s22  ;;  %v594_v40 = vsel %vm572_vm1, %v592_v39, 0.0  ;;  %v238_v48 = vrot.slane %v1531_v0, 1 }
 0x1e8   : > { %v365_v21 = vmul.f32 0.0001, %v349_v20 }
 0x1e9   : > { %v333_v22 = vpop.permute.xlu0 %332 }
 0x1ea   : > { %v350_v23 = vadd.f32 %v333_v22, %v310_v50  ;;  %386 = vrot.lane.b32.xlu1 %v365_v21, %s1363_s22  ;;  %v241_v50 = vrot.slane %v1549_v3, 1  ;;  %v232_v22 = vsel %vm229_vm2, %v225_v59, %v226_v9 }
 0x1ec   : > { %v366_v24 = vmul.f32 0.0001, %v350_v23  ;;  %v251_v63 = vsel %vm246_vm3, %v240_v44, %v241_v50 }
 0x1ed   : > { %v257_v14 = vadd.f32 %v251_v63, %v235_v62  ;;  %v744_v62 = vmul.f32 0.0, %v1531_v0 }
 0x1ee   : > { %388 = vrot.lane.b32.xlu0 %v366_v24, %s1363_s22  ;;  %v248_v24 = vsel %vm246_vm3, %v243_v60, %v244_v12 }
 0x1ef   : > { %v354_v31 = vmul.f32 0.0001, %v257_v14  ;;  %v413_v14 = vmul.f32 0.0004, %v1561_v5 }
 0x23d   : > { %v551_v25 = vpop.permute.xlu1 %550 }
 0x23e   : > { %v553_v26 = vadd.f32 %v551_v25, %v548_v52  ;;  %v236_v52 = vsel %vm229_vm2, %v221_v46, %v222_v43  ;;  %v227_v25 = vrot.slane %v1567_v6, 7  ;;  %v410_v43 = vmul.f32 0.0004, %v1543_v2 }
 0x23f   : > { %v256_v61 = vadd.f32 %v252_v51, %v236_v52 }
 0x240   : > { %v556_v28 = vrot.slane %v553_v26, 1  ;;  %v245_v26 = vrot.slane %v1573_v7, 1  ;;  %v231_v18 = vsel %vm229_vm2, %v226_v9, %v227_v25 }
 0x241   : > { %v335_v29 = vpop.permute.xlu0 %334  ;;  %v353_v20 = vmul.f32 0.0001, %v256_v61 }
 0x242   : > { %v351_v30 = vadd.f32 %v335_v29, %v311_v54  ;;  %557 = vrot.lane.b32.xlu1 %v556_v28, %s1363_s22  ;;  %v242_v54 = vrot.slane %v1555_v4, 1  ;;  %v1719_v28 = vmul.f32 2.0, %v1580_v17  ;;  %v1722_v29 = vmul.f32 2.0, %v1578_v8 }
 0x243   : > { %v247_v39 = vsel %vm246_vm3, %v244_v12, %v245_v26  ;;  %v1758_v12 = vsel %vm714_vm13, 1.0, %v1364_v49 }
 0x244   : > { %v367_v33 = vmul.f32 0.0001, %v351_v30  ;;  %v250_v11 = vsel %vm246_vm3, %v241_v50, %v242_v54  ;;  %v249_v16 = vsel %vm246_vm3, %v242_v54, %v243_v60  ;;  %v1737_v50 = vsel %vm713_vm9, 1.0, %v1364_v49 }
 0x245   : > { %v613_v34 = vpop.permute.xlu1 %612  ;;  %v258_v21 = vadd.f32 %v250_v11, %v234_v10  ;;  %v259_v27 = vadd.f32 %v249_v16, %v233_v15  ;;  %v261_v53 = vadd.f32 %v247_v39, %v231_v18  ;;  %v412_v60 = vmul.f32 0.0004, %v1555_v4 }
 0x246   : > { %652 = vrot.lane.b32.xlu1 %v651_v32, %s1363_s22  ;;  %390 = vrot.lane.b32.xlu0 %v367_v33, %s1363_s22  ;;  %v615_v36 = vadd.f32 %v613_v34, %v610_v58  ;;  %v253_v58 = vsel %vm246_vm3, %v238_v48, %v239_v47  ;;  %v214_v32 = vadd.s32 24, %v1663_v42  ;;  %v409_v33 = vmul.f32 0.0004, %v1537_v1 }
 0x247   : > { %v255_v13 = vadd.f32 %v253_v58, %v237_v55  ;;  %v355_v35 = vmul.f32 0.0001, %v258_v21  ;;  %v356_v44 = vmul.f32 0.0001, %v259_v27  ;;  %v411_v55 = vmul.f32 0.0004, %v1549_v3 }
 0x248   : > { %v377_v19 = vpop.permute.xlu0 %376  ;;  %vm689_vm10 = vcmp.le.s32.totalorder %v214_v32, 25  ;;  %v745_v63 = vmul.f32 %v1737_v50, %v1537_v1  ;;  %v358_v16 = vmul.f32 0.0001, %v261_v53  ;;  %v746_v32 = vmul.f32 %v1758_v12, %v1543_v2 }
 0x249   : > { %v352_v30 = vmul.f32 0.0001, %v255_v13  ;;  %vm1750_vm15 = vmand %vm689_vm10, %vm702_vm5  ;;  %v896_v27 = vmul.f32 0.0, %v1537_v1  ;;  %vm862_vm9 = vcmp.le.s32.totalorder %v1686_v57, 20 }
 0x24a   : > { %623 = vrot.lane.b32.xlu0 %v615_v36, %s1363_s22  ;;  %v260_v36 = vadd.f32 %v248_v24, %v232_v22  ;;  %v645_v24 = vmul.f32 4.0, %v1531_v0  ;;  %vm715_vm4 = vmand %vm1750_vm15, %vm711_vm7 }
 0x24b   : > { %v400_v46 = vadd.f32 %v377_v19, %v352_v30  ;;  %v414_v19 = vmul.f32 0.0004, %v1567_v6  ;;  %vm1779_vm5 = vmand %vm448_vm11, %vm457_vm14  ;;  %v230_v30 = vsel %vm229_vm2, %v227_v25, %v228_v45 }
 0x24c   : > { %v379_v23 = vpop.permute.xlu1 %378  ;;  %v357_v52 = vmul.f32 0.0001, %v260_v36  ;;  %vm1801_vm2 = vmand %vm1764_vm0, %vm457_vm14 }
 0x24d   : > { %v401_v37 = vadd.f32 %v379_v23, %v353_v20  ;;  %v416_v9 = vsub.f32 %v400_v46, %v408_v41 }
 0x24f   : > { %v417_v54 = vsub.f32 %v401_v37, %v409_v33  ;;  %v1794_v33 = vsel %vm482_vm12, %v744_v62, 0.0  ;;  %v753_v37 = vsel %vm482_vm12, %v745_v63, 0.0  ;;  %v218_v62 = vadd.s32 56, %v1663_v42 }
 0x250   : > { %v381_v34 = vpop.permute.xlu0 %380  ;;  %v754_v46 = vadd.f32 %v753_v37, %v1794_v33 }
 0x251   : > { %v402_v47 = vadd.f32 %v381_v34, %v354_v31  ;;  %v467_v20 = vand.u32 2147483647, %v417_v54  ;;  %v254_v31 = vsel %vm246_vm3, %v245_v26, %v238_v48  ;;  %v466_v34 = vand.u32 2147483647, %v416_v9 }
 0x252   : > { %v644_v26 = vmul.f32 2.0, %v1531_v0  ;;  %vm439_vm3 = vcmp.le.s32.totalorder %v218_v62, 62 }
 0x253   : > { %v418_v10 = vsub.f32 %v402_v47, %v410_v43  ;;  %v475_v18 = vsel %vm1779_vm5, %v467_v20, 0.0  ;;  %v554_v43 = vmul.f32 4.004, %v1580_v17  ;;  %v755_v47 = vsel %vm482_vm12, %v746_v32, 0.0  ;;  %vm456_vm6 = vmand %vm439_vm3, %vm448_vm11 }
 0x254   : > { %v383_v38 = vpop.permute.xlu1 %382  ;;  %v563_v17 = vrot.slane %v1719_v28, 7  ;;  %v748_v28 = vmul.f32 0.0, %v1555_v4  ;;  %vm465_vm7 = vmand %vm456_vm6, %vm457_vm14  ;;  %vm1045_vm3 = vcmp.eq.s32.totalorder %v1686_v57, 2 }
 0x255   : > { %v403_v56 = vadd.f32 %v383_v38, %v355_v35  ;;  %v468_v35 = vand.u32 2147483647, %v418_v10  ;;  %v1807_v38 = vsel %vm715_vm4, 1.0, %v1364_v49  ;;  %vm868_vm11 = vmand %vm853_vm8, %vm862_vm9  ;;  %vm1036_vm4 = vcmp.eq.s32.totalorder %v1663_v42, 0 }
 0x256   : > { %v747_v54 = vmul.f32 %v1807_v38, %v1549_v3 }
 0x257   : > { %v419_v21 = vsub.f32 %v403_v56, %v411_v55  ;;  %v484_v55 = vsel %vm482_vm12, %v475_v18, 0.0 }
 0x258   : > { %v385_v51 = vpop.permute.xlu0 %384 }
 0x259   : > { %v404_v11 = vadd.f32 %v385_v51, %v356_v44  ;;  %v469_v39 = vand.u32 2147483647, %v419_v21  ;;  %v262_v44 = vadd.f32 %v254_v31, %v230_v30  ;;  %v474_v51 = vsel %vm1801_vm2, %v466_v34, 0.0 }
 0x25a   : > { %v483_v63 = vsel %vm482_vm12, %v474_v51, 0.0  ;;  %v619_v30 = vrot.slane %v1722_v29, 1  ;;  %vm1041_vm2 = vcmp.eq.s32.totalorder %v1686_v57, 1 }
 0x25b   : > { %v420_v36 = vsub.f32 %v404_v11, %v412_v60  ;;  %v359_v10 = vmul.f32 0.0001, %v262_v44  ;;  %v756_v11 = vadd.f32 %v755_v47, %v754_v46  ;;  %v485_v13 = vadd.f32 %v484_v55, %v483_v63 }
 0x25c   : > { %v387_v58 = vpop.permute.xlu1 %386 }
 0x25d   : > { %v405_v15 = vadd.f32 %v387_v58, %v357_v52  ;;  %v476_v52 = vsel %vm1779_vm5, %v468_v35, 0.0  ;;  %v470_v53 = vand.u32 2147483647, %v420_v36  ;;  %v415_v35 = vmul.f32 0.0004, %v1573_v7 }
 0x25e   : > { %v486_v9 = vsel %vm482_vm12, %v476_v52, 0.0 }
 0x25f   : > { %v421_v48 = vsub.f32 %v405_v15, %v413_v14  ;;  %v478_v14 = vsel %vm1779_vm5, %v470_v53, 0.0 }
 0x260   : > { %v389_v22 = vpop.permute.xlu0 %388  ;;  %v490_v31 = vsel %vm482_vm12, %v478_v14, 0.0 }
 0x261   : > { %v406_v25 = vadd.f32 %v389_v22, %v358_v16  ;;  %v471_v56 = vand.u32 2147483647, %v421_v48  ;;  %v757_v16 = vsel %vm482_vm12, %v747_v54, 0.0 }
 0x263   : > { %v422_v58 = vsub.f32 %v406_v25, %v414_v19  ;;  %v479_v20 = vsel %vm1779_vm5, %v471_v56, 0.0  ;;  %v758_v25 = vadd.f32 %v757_v16, %v756_v11 }
 0x264   : > { %v492_v37 = vsel %vm482_vm12, %v479_v20, 0.0 }
 0x265   : > { %v472_v21 = vand.u32 2147483647, %v422_v58 }
 0x269   : > { %595 = vadd.xlane.f32.xlu0 %v594_v40  ;;  %v1169_v40 = vadd.f32 273.15, %v1531_v0 }
 0x26b   : > { %v642_v59 = vmul.f32 %v1169_v40, %v1169_v40  ;;  %v647_v40 = vrot.slane %v645_v24, 7  ;;  %v616_v24 = vmul.f32 4.0, %v1578_v8  ;;  %v480_v8 = vsel %vm1779_vm5, %v472_v21, 0.0 }
 0x26c   : > { %v494_v52 = vsel %vm482_vm12, %v480_v8, 0.0 }
 0x26d   : > { %v643_v23 = vmul.f32 %v642_v59, %v642_v59  ;;  %v477_v59 = vsel %vm1779_vm5, %v469_v39, 0.0  ;;  %v649_v60 = vsub.f32 %v644_v26, %v647_v40  ;;  %v759_v26 = vsel %vm482_vm12, %v748_v28, 0.0 }
 0x26e   : > { %v488_v19 = vsel %vm482_vm12, %v477_v59, 0.0  ;;  %v621_v46 = vsub.f32 %v616_v24, %v619_v30  ;;  %v760_v53 = vadd.f32 %v759_v26, %v758_v25  ;;  %v751_v28 = vmul.f32 0.0, %v1573_v7 }
 0x26f   : > { %v1170_v41 = vadd.f32 -7.9020406e+09, %v643_v23  ;;  %v487_v23 = vadd.f32 %v486_v9, %v485_v13 }
 0x270   : > { %v765_v24 = vsel %vm482_vm12, %v751_v28, 0.0 }
 0x271   : > { %v657_v61 = vmul.f32 1.8144e-11, %v1170_v41  ;;  %v489_v36 = vadd.f32 %v488_v19, %v487_v23  ;;  %v749_v41 = vmul.f32 0.0, %v1561_v5 }
 0x273   : > { %v659_v34 = vrot.slane %v657_v61, 7  ;;  %v491_v40 = vadd.f32 %v490_v31, %v489_v36  ;;  %v761_v59 = vsel %vm482_vm12, %v749_v41, 0.0  ;;  %v898_v36 = vmul.f32 0.0, %v1549_v3 }
 0x274   : > { %v762_v14 = vadd.f32 %v761_v59, %v760_v53 }
 0x275   : > { %v493_v51 = vadd.f32 %v492_v37, %v491_v40  ;;  %v904_v37 = vsel %vm482_vm12, %v896_v27, 0.0  ;;  %v908_v26 = vsel %vm482_vm12, %v898_v36, 0.0 }
 0x277   : > { %v495_v62 = vadd.f32 %v494_v52, %v493_v51 }
 0x2b4   : > { %v558_v15 = vpop.permute.xlu1 %557 }
 0x2b5   : > { %v560_v22 = vsub.f32 %v554_v43, %v558_v15 }
 0x2b7   : > { %v565_v32 = vsub.f32 %v560_v22, %v563_v17  ;;  %v750_v17 = vmul.f32 0.0, %v1567_v6 }
 0x2b8   : > { %v653_v45 = vpop.permute.xlu1 %652  ;;  %v391_v48 = vpop.permute.xlu0 %390 }
 0x2b9   : > { %v1167_v18 = vadd.f32 -0.1, %v565_v32  ;;  %v655_v29 = vadd.f32 %v653_v45, %v649_v60  ;;  %v407_v39 = vadd.f32 %v391_v48, %v359_v10  ;;  %v763_v16 = vsel %vm482_vm12, %v750_v17, 0.0 }
 0x2ba   : > { %v764_v22 = vadd.f32 %v763_v16, %v762_v14  ;;  %v215_v32 = vadd.s32 32, %v1663_v42  ;;  %v1875_v45 = vsel %vm868_vm11, 1.0, %v1364_v49  ;;  %v905_v48 = vadd.f32 %v904_v37, %v1794_v33 }
 0x2bb   : > { %v661_v43 = vsub.f32 %v655_v29, %v659_v34  ;;  %v423_v44 = vsub.f32 %v407_v39, %v415_v35  ;;  %v567_v54 = vand.u32 2147483647, %v1167_v18  ;;  %v217_v34 = vadd.s32 48, %v1663_v42 }
 0x2bc   : > { %v624_v47 = vpop.permute.xlu0 %623  ;;  %v766_v31 = vadd.f32 %v765_v24, %v764_v22  ;;  %v897_v35 = vmul.f32 0.0, %v1543_v2  ;;  %vm833_vm10 = vcmp.ge.s32.totalorder %v215_v32, 35  ;;  %v900_v8 = vmul.f32 %v1875_v45, %v1561_v5 }
 0x2bd   : > { %v662_v55 = vand.u32 2147483647, %v661_v43  ;;  %v473_v56 = vand.u32 2147483647, %v423_v44  ;;  %v626_v58 = vsub.f32 %v621_v46, %v624_v47  ;;  %v568_v13 = vsel %vm1779_vm5, %v567_v54, 0.0  ;;  %vm858_vm13 = vmand %vm833_vm10, %vm853_vm8 }
 0x2be   : > { %v570_v21 = vrot.slane %v568_v13, 7  ;;  %v906_v25 = vsel %vm482_vm12, %v897_v35, 0.0  ;;  %vm867_vm15 = vmand %vm858_vm13, %vm862_vm9  ;;  %v912_v44 = vsel %vm482_vm12, %v900_v8, 0.0  ;;  %vm1061_vm13 = vcmp.eq.s32.totalorder %v1686_v57, 8 }
 0x2bf   : > { %v1168_v60 = vadd.f32 -0.4, %v626_v58  ;;  %v481_v61 = vsel %vm465_vm7, %v473_v56, 0.0  ;;  %v663_v63 = vsel %vm1779_vm5, %v662_v55, 0.0  ;;  %v907_v18 = vadd.f32 %v906_v25, %v905_v48  ;;  %vm1046_vm10 = vmand %vm1036_vm4, %vm1045_vm3 }
 0x2c0   : > { %v496_v9 = vsel %vm482_vm12, %v481_v61, 0.0  ;;  %v665_v15 = vrot.slane %v663_v63, 1  ;;  %v573_v30 = vsel %vm572_vm1, %v570_v21, 0.0  ;;  %v1887_v29 = vsel %vm867_vm15, 1.0, %v1364_v49  ;;  %vm1062_vm15 = vmand %vm1036_vm4, %vm1061_vm13 }
 0x2c1   : > { %v628_v10 = vand.u32 2147483647, %v1168_v60  ;;  %v497_v11 = vadd.f32 %v496_v9, %v495_v62  ;;  %v899_v39 = vmul.f32 %v1887_v29, %v1555_v4  ;;  %v909_v40 = vadd.f32 %v908_v26, %v907_v18 }
 0x2c2   : > { %v667_v23 = vsel %vm572_vm1, %v665_v15, 0.0  ;;  %vm1049_vm7 = vcmp.eq.s32.totalorder %v1686_v57, 3 }
 0x2c3   : > { %498 = vadd.xlane.f32.xlu1 %v497_v11  ;;  %v629_v19 = vsel %vm1779_vm5, %v628_v10, 0.0  ;;  %v910_v43 = vsel %vm482_vm12, %v899_v39, 0.0  ;;  %vm1037_vm5 = vcmp.eq.s32.totalorder %v1686_v57, 0  ;;  %vm1050_vm11 = vmand %vm1036_vm4, %vm1049_vm7 }
 0x2c4   : > { %v630_v20 = vsel %vm572_vm1, %v629_v19, 0.0  ;;  %vm843_vm1 = vcmp.le.s32.totalorder %v217_v34, 50  ;;  %v911_v46 = vadd.f32 %v910_v43, %v909_v40  ;;  %vm1038_vm6 = vmand %vm1036_vm4, %vm1037_vm5 }
 0x2c5   : > { %631 = vadd.xlane.f32.xlu0 %v630_v20  ;;  %vm860_vm14 = vmand %vm843_vm1, %vm853_vm8 }
 0x2c6   : > { %vm869_vm0 = vmand %vm860_vm14, %vm862_vm9  ;;  %v913_v51 = vadd.f32 %v912_v44, %v911_v46  ;;  %vm1053_vm9 = vcmp.eq.s32.totalorder %v1686_v57, 4 }
 0x2c7   : > { %668 = vadd.xlane.f32.xlu1 %v667_v23  ;;  %v1890_v33 = vsel %vm869_vm0, 1.0, %v1364_v49  ;;  %vm1042_vm8 = vmand %vm1036_vm4, %vm1041_vm2 }
 0x2c8   : > { %v901_v41 = vmul.f32 %v1890_v33, %v1567_v6  ;;  %vm1054_vm1 = vmand %vm1036_vm4, %vm1053_vm9 }
 0x2c9   : > { %574 = vadd.xlane.f32.xlu0 %v573_v30 }
 0x2ca   : > { %v914_v47 = vsel %vm482_vm12, %v901_v41, 0.0 }
 0x2cb   : > { %v915_v52 = vadd.f32 %v914_v47, %v913_v51 }
 0x2cd   : > { %767 = vadd.xlane.f32.xlu0 %v766_v31  ;;  %v917_v53 = vadd.f32 %v915_v52, %v765_v24 }
 0x2d1   : > { %918 = vadd.xlane.f32.xlu0 %v917_v53 }
 0x2f2   : > { %v596_v49 = vpop.xlane.xlu0 %595 }
 0x2f3   : > { %v597_v54 = vrot.slane %v596_v49, 4 }
 0x2f5   : > { %v598_v58 = vadd.f32 %v597_v54, %v596_v49 }
 0x2f7   : > { %v599_v10 = vrot.slane %v598_v58, 2 }
 0x2f9   : > { %v600_v22 = vadd.f32 %v599_v10, %v598_v58 }
 0x2fb   : > { %v601_v35 = vrot.slane %v600_v22, 1 }
 0x2fd   : > { %v602_v18 = vadd.f32 %v601_v35, %v600_v22 }
 0x34c   : > { %v499_v55 = vpop.xlane.xlu1 %498 }
 0x34d   : > { %v500_v56 = vrot.slane %v499_v55, 4 }
 0x34e   : > { %v632_v17 = vpop.xlane.xlu0 %631 }
 0x34f   : > { %v501_v59 = vadd.f32 %v500_v56, %v499_v55  ;;  %v633_v60 = vrot.slane %v632_v17, 4 }
 0x350   : > { %v669_v61 = vpop.xlane.xlu1 %668 }
 0x351   : > { %v502_v62 = vrot.slane %v501_v59, 2  ;;  %v634_v63 = vadd.f32 %v633_v60, %v632_v17  ;;  %v670_v9 = vrot.slane %v669_v61, 4 }
 0x352   : > { %v575_v11 = vpop.xlane.xlu0 %574 }
 0x353   : > { %v635_v13 = vrot.slane %v634_v63, 2  ;;  %v671_v14 = vadd.f32 %v670_v9, %v669_v61  ;;  %v576_v15 = vrot.slane %v575_v11, 4  ;;  %v503_v28 = vadd.f32 %v502_v62, %v501_v59 }
 0x355   : > { %v672_v16 = vrot.slane %v671_v14, 2  ;;  %v577_v19 = vadd.f32 %v576_v15, %v575_v11  ;;  %v504_v20 = vrot.slane %v503_v28, 1  ;;  %v636_v31 = vadd.f32 %v635_v13, %v634_v63 }
 0x356   : > { %v768_v21 = vpop.xlane.xlu0 %767 }
 0x357   : > { %v578_v23 = vrot.slane %v577_v19, 2  ;;  %v769_v24 = vrot.slane %v768_v21, 4  ;;  %v505_v30 = vadd.f32 %v504_v20, %v503_v28  ;;  %v673_v32 = vadd.f32 %v672_v16, %v671_v14 }
 0x358   : > { %v637_v48 = vrot.slane %v636_v31, 1 }
 0x359   : > { %v770_v27 = vadd.f32 %v769_v24, %v768_v21  ;;  %1181 = vpush %v505_v30  ;;  %v579_v34 = vadd.f32 %v578_v23, %v577_v19  ;;  %v674_v25 = vrot.slane %v673_v32, 1 }
 0x35a   : > { %v638_v39 = vadd.f32 %v637_v48, %v636_v31 }
 0x35b   : > { %v771_v36 = vrot.slane %v770_v27, 2  ;;  %v580_v37 = vrot.slane %v579_v34, 1  ;;  %v675_v41 = vadd.f32 %v674_v25, %v673_v32 }
 0x35d   : > { %v581_v26 = vadd.f32 %v580_v37, %v579_v34  ;;  %v772_v8 = vadd.f32 %v771_v36, %v770_v27 }
 0x35f   : > { %1183 = vpush %v581_v26  ;;  %v773_v40 = vrot.slane %v772_v8, 1 }
 0x360   : > { %1185 = vpush %v602_v18 }
 0x361   : > { %1187 = vpush %v638_v39  ;;  %v774_v43 = vadd.f32 %v773_v40, %v772_v8 }
 0x362   : > { %1189 = vpush %v675_v41 }
 0x363   : > { %1191 = vpush %v774_v43 }
 0x38a   : > { %s1182_s29 = spop %1181 }
 0x38b   : > { %v1039_v44 = vstv %s1182_s29 }
 0x38c   : > { %v1040_v46 = vsel %vm1038_vm6, %v1039_v44, 0.0 }
 0x390   : > { %s1184_s30 = spop %1183 }
 0x391   : > { %s1186_s4 = spop %1185  ;;  %v1051_v53 = vstv %s1184_s30 }
 0x392   : > { %s1188_s24 = spop %1187  ;;  %v1055_v54 = vstv %s1186_s4 }
 0x393   : > { %v1043_v47 = vstv %s1188_s24  ;;  %s1190_s26 = spop %1189 }
 0x394   : > { %v1044_v51 = vsel %vm1042_vm8, %v1043_v47, %v1040_v46  ;;  %v1047_v52 = vstv %s1190_s26  ;;  %s1192_s12 = spop %1191  ;;  %v980_v46 = vld [vmem:[%s1524_s3] sm:$0xff]  ;;  %v981_v47 = vld [vmem:[%s1524_s3 + $0x8] sm:$0xff] }
 0x395   : > { %v1048_v49 = vsel %vm1046_vm10, %v1047_v52, %v1044_v51  ;;  %s778_s21 = smul.f32 0.00390625, %s1192_s12  ;;  %v988_v51 = vsub.f32 %v980_v46, %v1531_v0  ;;  %v989_v52 = vsub.f32 %v981_v47, %v1537_v1 }
 0x396   : > { %v1052_v55 = vsel %vm1050_vm11, %v1051_v53, %v1048_v49  ;;  %v982_v53 = vld [vmem:[%s1524_s3 + $0x10] sm:$0xff] }
 0x397   : > { %v779_v56 = vstv %s778_s21  ;;  %v1915_v58 = vsel %vm1054_vm1, %v1055_v54, %v1052_v55  ;;  %v990_v49 = vsub.f32 %v982_v53, %v1543_v2  ;;  %v996_v54 = vand.u32 2147483647, %v988_v51 }
 0x398   : > { %v780_v17 = vsub.f32 %v1531_v0, %v779_v56  ;;  %v781_v59 = vsub.f32 %v1537_v1, %v779_v56  ;;  %v782_v60 = vsub.f32 %v1543_v2, %v779_v56  ;;  %v783_v61 = vsub.f32 %v1549_v3, %v779_v56 }
 0x399   : > { %v784_v62 = vsub.f32 %v1555_v4, %v779_v56  ;;  %v785_v9 = vsub.f32 %v1561_v5, %v779_v56  ;;  %v786_v14 = vsub.f32 %v1567_v6, %v779_v56  ;;  %v787_v19 = vsub.f32 %v1573_v7, %v779_v56  ;;  %v983_v56 = vld [vmem:[%s1524_s3 + $0x18] sm:$0xff] }
 0x39a   : > { %v789_v63 = vand.u32 2147483647, %v781_v59  ;;  %v788_v10 = vand.u32 2147483647, %v780_v17  ;;  %v790_v11 = vand.u32 2147483647, %v782_v60 }
 0x39b   : > { %v791_v13 = vand.u32 2147483647, %v783_v61  ;;  %v792_v15 = vand.u32 2147483647, %v784_v62  ;;  %v793_v21 = vand.u32 2147483647, %v785_v9 }
 0x39c   : > { %v796_v28 = vmul.f32 0.0, %v788_v10  ;;  %v797_v16 = vmul.f32 %v1737_v50, %v789_v63  ;;  %v798_v20 = vmul.f32 %v1758_v12, %v790_v11  ;;  %v794_v30 = vand.u32 2147483647, %v786_v14  ;;  %v984_v17 = vld [vmem:[%s1524_s3 + $0x20] sm:$0xff]  ;;  %v985_v59 = vld [vmem:[%s1524_s3 + $0x28] sm:$0xff]  ;;  %v986_v60 = vld [vmem:[%s1524_s3 + $0x30] sm:$0xff] }
 0x39d   : > { %v799_v3 = vmul.f32 %v1807_v38, %v791_v13  ;;  %v800_v31 = vmul.f32 0.0, %v792_v15  ;;  %v795_v34 = vand.u32 2147483647, %v787_v19  ;;  %v801_v35 = vmul.f32 0.0, %v793_v21  ;;  %v987_v61 = vld [vmem:[%s1524_s3 + $0x38] sm:$0xff] }
 0x39e   : > { %v804_v22 = vsel %vm482_vm12, %v796_v28, 0.0  ;;  %v805_v23 = vsel %vm482_vm12, %v797_v16, 0.0  ;;  %v807_v32 = vsel %vm482_vm12, %v798_v20, 0.0  ;;  %v802_v48 = vmul.f32 0.0, %v794_v30  ;;  %v1948_v62 = vld [vmem:[%s1518_s25 + $0x18] sm:$0xff] }
 0x39f   : > { %v806_v24 = vadd.f32 %v805_v23, %v804_v22  ;;  %v809_v36 = vsel %vm482_vm12, %v799_v3, 0.0  ;;  %v811_v25 = vsel %vm482_vm12, %v800_v31, 0.0  ;;  %v803_v8 = vmul.f32 0.0, %v795_v34 }
 0x3a0   : > { %v813_v18 = vsel %vm482_vm12, %v801_v35, 0.0  ;;  %v815_v40 = vsel %vm482_vm12, %v802_v48, 0.0  ;;  %v997_v55 = vand.u32 2147483647, %v989_v52  ;;  %v991_v63 = vsub.f32 %v983_v56, %v1948_v62  ;;  %v919_v48 = vpop.xlane.xlu0 %918 }
 0x3a1   : > { %v808_v27 = vadd.f32 %v807_v32, %v806_v24  ;;  %v817_v43 = vsel %vm482_vm12, %v803_v8, 0.0  ;;  %v992_v9 = vsub.f32 %v984_v17, %v1555_v4  ;;  %v993_v0 = vsub.f32 %v985_v59, %v1561_v5  ;;  %v1256_v17 = vld [vmem:[%s1518_s25 + $0x10] sm:$0xff] }
 0x3a2   : > { %v998_v10 = vand.u32 2147483647, %v990_v49  ;;  %v994_v1 = vsub.f32 %v986_v60, %v1567_v6  ;;  %v995_v2 = vsub.f32 %v987_v61, %v1573_v7  ;;  %v1004_v11 = vmul.f32 0.0, %v996_v54  ;;  %v1254_v49 = vld [vmem:[%s1518_s25] sm:$0xff] }
 0x3a3   : > { %v810_v37 = vadd.f32 %v809_v36, %v808_v27  ;;  %v1005_v13 = vmul.f32 %v1737_v50, %v997_v55  ;;  %v999_v14 = vand.u32 2147483647, %v991_v63  ;;  %v1000_v15 = vand.u32 2147483647, %v992_v9  ;;  %v1255_v55 = vld [vmem:[%s1518_s25 + $0x8] sm:$0xff]  ;;  %v1257_v61 = vld [vmem:[%s1518_s25 + $0x20] sm:$0xff] }
 0x3a4   : > { %v1001_v28 = vand.u32 2147483647, %v993_v0  ;;  %v1006_v16 = vmul.f32 %v1758_v12, %v998_v10  ;;  %v1002_v19 = vand.u32 2147483647, %v994_v1  ;;  %v1012_v20 = vsel %vm482_vm12, %v1004_v11, 0.0  ;;  %v1258_v9 = vld [vmem:[%s1518_s25 + $0x28] sm:$0xff] }
 0x3a5   : > { %v812_v26 = vadd.f32 %v811_v25, %v810_v37  ;;  %v1013_v4 = vsel %vm482_vm12, %v1005_v13, 0.0  ;;  %v1007_v5 = vmul.f32 %v1807_v38, %v999_v14  ;;  %v1008_v21 = vmul.f32 %v1887_v29, %v1000_v15  ;;  %v1259_v13 = vld [vmem:[%s1518_s25 + $0x30] sm:$0xff] }
 0x3a6   : > { %v1014_v6 = vadd.f32 %v1013_v4, %v1012_v20  ;;  %v1003_v3 = vand.u32 2147483647, %v995_v2  ;;  %v1009_v7 = vmul.f32 %v1875_v45, %v1001_v28  ;;  %v1015_v50 = vsel %vm482_vm12, %v1006_v16, 0.0 }
 0x3a7   : > { %v814_v39 = vadd.f32 %v813_v18, %v812_v26  ;;  %v1017_v23 = vsel %vm482_vm12, %v1007_v5, 0.0  ;;  %v1010_v12 = vmul.f32 %v1890_v33, %v1002_v19  ;;  %v1019_v24 = vsel %vm482_vm12, %v1008_v21, 0.0  ;;  %v1260_v19 = vld [vmem:[%s1518_s25 + $0x38] sm:$0xff] }
 0x3a8   : > { %v1016_v22 = vadd.f32 %v1015_v50, %v1014_v6  ;;  %v1011_v31 = vmul.f32 0.0, %v1003_v3  ;;  %v1021_v32 = vsel %vm482_vm12, %v1009_v7, 0.0  ;;  %v920_v25 = vrot.slane %v919_v48, 4 }
 0x3a9   : > { %v816_v41 = vadd.f32 %v815_v40, %v814_v39  ;;  %v1023_v27 = vsel %vm482_vm12, %v1010_v12, 0.0 }
 0x3aa   : > { %v1018_v30 = vadd.f32 %v1017_v23, %v1016_v22  ;;  %v1025_v35 = vsel %vm482_vm12, %v1011_v31, 0.0  ;;  %v921_v26 = vadd.f32 %v920_v25, %v919_v48 }
 0x3ab   : > { %v818_v44 = vadd.f32 %v817_v43, %v816_v41 }
 0x3ac   : > { %v1020_v38 = vadd.f32 %v1019_v24, %v1018_v30  ;;  %v922_v8 = vrot.slane %v921_v26, 2 }
 0x3ad   : > { %819 = vadd.xlane.f32.xlu1 %v818_v44 }
 0x3ae   : > { %v1022_v34 = vadd.f32 %v1021_v32, %v1020_v38  ;;  %v923_v41 = vadd.f32 %v922_v8, %v921_v26 }
 0x3b0   : > { %v1024_v36 = vadd.f32 %v1023_v27, %v1022_v34  ;;  %v924_v46 = vrot.slane %v923_v41, 1 }
 0x3b2   : > { %v1026_v37 = vadd.f32 %v1025_v35, %v1024_v36  ;;  %v925_v52 = vadd.f32 %v924_v46, %v923_v41 }
 0x3b4   : > { %1027 = vadd.xlane.f32.xlu0 %v1026_v37 }
 0x436   : > { %v820_v18 = vpop.xlane.xlu1 %819 }
 0x437   : > { %v821_v39 = vrot.slane %v820_v18, 4 }
 0x439   : > { %v822_v40 = vadd.f32 %v821_v39, %v820_v18 }
 0x43b   : > { %v823_v43 = vrot.slane %v822_v40, 2 }
 0x43d   : > { %v824_v44 = vadd.f32 %v823_v43, %v822_v40 }
 0x43f   : > { %v825_v47 = vrot.slane %v824_v44, 1 }
 0x441   : > { %v826_v51 = vadd.f32 %v825_v47, %v824_v44 }
 0x443   : > { %1193 = vpush %v826_v51 }
 0x444   : > { %1195 = vpush %v925_v52 }
 0x474   : > { %s1969_s28 = spop %1193 }
 0x475   : > { %s1196_s5 = spop %1195 }
 0x476   : > { %s929_s6 = smul.f32 0.00390625, %s1196_s5 }
 0x478   : > { %v930_v53 = vstv %s929_s6 }
 0x479   : > { %v931_v54 = vsub.f32 %v1254_v49, %v930_v53  ;;  %v932_v56 = vsub.f32 %v1255_v55, %v930_v53  ;;  %v933_v59 = vsub.f32 %v1256_v17, %v930_v53  ;;  %v934_v60 = vsub.f32 %v1948_v62, %v930_v53 }
 0x47a   : > { %v935_v63 = vsub.f32 %v1257_v61, %v930_v53  ;;  %v936_v0 = vsub.f32 %v1258_v9, %v930_v53  ;;  %v937_v14 = vsub.f32 %v1259_v13, %v930_v53  ;;  %v938_v20 = vsub.f32 %v1260_v19, %v930_v53 }
 0x47b   : > { %v939_v10 = vand.u32 2147483647, %v931_v54  ;;  %v940_v1 = vand.u32 2147483647, %v932_v56  ;;  %v941_v2 = vand.u32 2147483647, %v933_v59 }
 0x47c   : > { %v942_v11 = vand.u32 2147483647, %v934_v60  ;;  %v943_v15 = vand.u32 2147483647, %v935_v63  ;;  %v944_v5 = vand.u32 2147483647, %v936_v0 }
 0x47d   : > { %v947_v28 = vmul.f32 0.0, %v939_v10  ;;  %v948_v16 = vmul.f32 0.0, %v940_v1  ;;  %v949_v4 = vmul.f32 0.0, %v941_v2  ;;  %v945_v7 = vand.u32 2147483647, %v937_v14 }
 0x47e   : > { %v950_v21 = vmul.f32 0.0, %v942_v11  ;;  %v951_v50 = vmul.f32 %v1887_v29, %v943_v15  ;;  %v946_v12 = vand.u32 2147483647, %v938_v20  ;;  %v952_v24 = vmul.f32 %v1875_v45, %v944_v5  ;;  %v1028_v45 = vpop.xlane.xlu0 %1027 }
 0x47f   : > { %v955_v62 = vsel %vm482_vm12, %v947_v28, 0.0  ;;  %v956_v6 = vsel %vm482_vm12, %v948_v16, 0.0  ;;  %v958_v22 = vsel %vm482_vm12, %v949_v4, 0.0  ;;  %v953_v32 = vmul.f32 %v1890_v33, %v945_v7 }
 0x480   : > { %v957_v3 = vadd.f32 %v956_v6, %v955_v62  ;;  %v960_v30 = vsel %vm482_vm12, %v950_v21, 0.0  ;;  %v962_v38 = vsel %vm482_vm12, %v951_v50, 0.0  ;;  %v954_v34 = vmul.f32 0.0, %v946_v12 }
 0x481   : > { %v964_v35 = vsel %vm482_vm12, %v952_v24, 0.0  ;;  %v966_v29 = vsel %vm482_vm12, %v953_v32, 0.0  ;;  %v1029_v26 = vrot.slane %v1028_v45, 4 }
 0x482   : > { %v959_v23 = vadd.f32 %v958_v22, %v957_v3  ;;  %v968_v48 = vsel %vm482_vm12, %v954_v34, 0.0  ;;  %vm1057_vm12 = vcmp.eq.s32.totalorder %v1686_v57, 7 }
 0x483   : > { %v1030_v8 = vadd.f32 %v1029_v26, %v1028_v45  ;;  %vm1058_vm14 = vmand %vm1036_vm4, %vm1057_vm12 }
 0x484   : > { %v961_v31 = vadd.f32 %v960_v30, %v959_v23 }
 0x485   : > { %v1031_v33 = vrot.slane %v1030_v8, 2 }
 0x486   : > { %v963_v27 = vadd.f32 %v962_v38, %v961_v31 }
 0x487   : > { %v1032_v41 = vadd.f32 %v1031_v33, %v1030_v8 }
 0x488   : > { %v965_v36 = vadd.f32 %v964_v35, %v963_v27 }
 0x489   : > { %v1033_v46 = vrot.slane %v1032_v41, 1 }
 0x48a   : > { %v967_v37 = vadd.f32 %v966_v29, %v965_v36 }
 0x48b   : > { %v1034_v52 = vadd.f32 %v1033_v46, %v1032_v41 }
 0x48c   : > { %v969_v25 = vadd.f32 %v968_v48, %v967_v37 }
 0x48e   : > { %970 = vadd.xlane.f32.xlu1 %v969_v25 }
 0x517   : > { %v971_v18 = vpop.xlane.xlu1 %970 }
 0x518   : > { %v972_v39 = vrot.slane %v971_v18, 4 }
 0x51a   : > { %v973_v40 = vadd.f32 %v972_v39, %v971_v18 }
 0x51c   : > { %v974_v43 = vrot.slane %v973_v40, 2 }
 0x51e   : > { %v975_v44 = vadd.f32 %v974_v43, %v973_v40 }
 0x520   : > { %v976_v47 = vrot.slane %v975_v44, 1 }
 0x522   : > { %v977_v51 = vadd.f32 %v976_v47, %v975_v44 }
 0x524   : > { %1197 = vpush %v977_v51 }
 0x525   : > { %1199 = vpush %v1034_v52 }
 0x555   : > { %s1198_s20 = spop %1197 }
 0x556   : > { %s979_s7 = sadd.f32 %s1198_s20, %s1969_s28  ;;  %s1200_s8 = spop %1199 }
 0x557   : > { %v1059_v53 = vstv %s1200_s8 }
 0x558   : > { %v1063_v49 = vstv %s979_s7  ;;  %v1060_v54 = vsel %vm1058_vm14, %v1059_v53, %v1915_v58 }
 0x559   : > { %v1064_v55 = vsel %vm1062_vm15, %v1063_v49, %v1060_v54 }
 0x55a   : > { %1065 = vst [vmem:[%s201_s23] sm:$0xff] %v1064_v55 }
 0x55b PF: > { %p15_p11 = scmp.ge.s32.totalorder %s1402_s14, 4   ;;  %s2033_s9 = smov %s1347_s10 }
 0x55c   : > { %s2034_s10 = smov %s1351_s11  ;;  %s2035_s11 = smov %s1412_s17 }
 0x55d   : > { %s2036_s12 = smov %s1402_s14  ;;  %17 = sbr.rel (!%p15_p11) target bundleno = 5 (0x5), region = 81 }
 0x562   :  { %1085 = vsyncpa [#allocation3], 1 }
 0x563   :  { %1087 = vsyncpa [#allocation3 + $0x1], 1 }
 0x564   :  { %1088 = vsyncpa [#allocation5], 1 }
 0x565   :  { %1090 = vsyncpa [#allocation5 + $0x1], 1 }

</bundles_post_ra>
